<compile_context>
chip_gen: v7x
topology: tpu7x:2x2x1
jax: 0.10.0
libtpu: 0.0.40
codegen_flags: <defaults>
</compile_context>

<pallas_src>
import functools

import jax
import jax.numpy as jnp
from jax.experimental import pallas as pl
from jax.experimental.pallas import tpu as pltpu


VMEM_LIMIT_BYTES = 32 * 1024 * 1024


# ---------------------------------------------------------------------------
# Pallas kernels
# ---------------------------------------------------------------------------
def _matmul_bias_act_kernel(x_ref, w_ref, b_ref, o_ref, acc_ref, *, act):
    """Tiled bf16 matmul with f32 accumulator; bias + activation at last k."""
    kk = pl.program_id(2)

    @pl.when(kk == 0)
    def _():
        acc_ref[...] = jnp.zeros_like(acc_ref)

    acc_ref[...] += jnp.dot(x_ref[...], w_ref[...],
                            preferred_element_type=jnp.float32)

    @pl.when(kk == pl.num_programs(2) - 1)
    def _():
        y = acc_ref[...] + b_ref[...]            # (tm, tn) + (1, tn), f32
        if act == "leaky":
            y = jnp.where(y > 0, y, 0.01 * y)    # nn.LeakyReLU() default slope
        else:                                    # "sigmoid"
            y = jax.nn.sigmoid(y)
        o_ref[...] = y.astype(o_ref.dtype)


def _maxpool2x2_kernel(x_ref, o_ref):
    # x_ref block: (R, 2, Wo, 2, C)  ->  o_ref block: (R, Wo, C)
    v = x_ref[...]
    m = jnp.maximum(v[:, 0], v[:, 1])            # (R, Wo, 2, C)
    o_ref[...] = jnp.maximum(m[:, :, 0, :], m[:, :, 1, :])


# ---------------------------------------------------------------------------
# Tile selection helpers
# ---------------------------------------------------------------------------
def _round_up(a, m):
    return (a + m - 1) // m * m


def _largest_divisor_tile(dim, unit, max_tile):
    """Largest multiple of `unit` that divides `dim` (a multiple of unit) and
    is <= max_tile."""
    q = dim // unit
    best = 1
    for d in range(1, q + 1):
        if q % d == 0 and unit * d <= max_tile:
            best = d
    return unit * best


def _pick_tm(m):
    """Row tile: largest multiple of 8 <= 512 that divides M (avoids padding
    the patch matrix); small M becomes a single (rounded-to-8) block."""
    if m <= 512:
        return _round_up(m, 8)
    m8 = _round_up(m, 8)
    best = 8
    for t in range(8, 513, 8):
        if m8 % t == 0:
            best = t
    return best if best >= 256 else 512


# ---------------------------------------------------------------------------
# Wrappers
# ---------------------------------------------------------------------------
def matmul_bias_act(x, w, b, act, out_dtype=jnp.bfloat16):
    """y = act(x @ w + b).  x:(M,K) w:(K,N) b:(N,).  bf16 MXU, f32 accumulate."""
    M, K = x.shape
    _, N = w.shape

    tm = _pick_tm(M)
    Mp = _round_up(M, tm)

    # K tiling: one full-K block when it fits; otherwise 128-aligned chunks.
    # Tiny-M matmuls (the batch-1 FC layers) get much larger K tiles so the
    # weight stream, not per-step overhead, dominates.
    max_tk = 4096 if tm <= 64 else 2304
    if K <= max_tk:
        Kp, tk = K, K
    else:
        Kp = _round_up(K, 128)
        tk = _largest_divisor_tile(Kp, 128, max_tk)

    # N tiling: full-N block up to 512 (no weight/bias/output padding),
    # otherwise 512-wide lane-dense tiles (also gives >=2 parallel j blocks
    # for the FC layers -> both v7x TensorCores get work).
    if N <= 512:
        Np, tn = N, N
    else:
        Np = _round_up(N, 128)
        tn = _largest_divisor_tile(Np, 128, 512)

    x = x.astype(jnp.bfloat16)
    w = w.astype(jnp.bfloat16)
    if (Mp, Kp) != (M, K):
        x = jnp.pad(x, ((0, Mp - M), (0, Kp - K)))
    if (Kp, Np) != (K, N):
        w = jnp.pad(w, ((0, Kp - K), (0, Np - N)))
    b = b.astype(jnp.float32)
    if Np != N:
        b = jnp.pad(b, (0, Np - N))
    b = b.reshape(1, Np)

    kernel = functools.partial(_matmul_bias_act_kernel, act=act)
    out = pl.pallas_call(
        kernel,
        out_shape=jax.ShapeDtypeStruct((Mp, Np), out_dtype),
        grid_spec=pltpu.PrefetchScalarGridSpec(
            num_scalar_prefetch=0,
            grid=(Mp // tm, Np // tn, Kp // tk),
            in_specs=[
                pl.BlockSpec((tm, tk), lambda i, j, kk: (i, kk)),
                pl.BlockSpec((tk, tn), lambda i, j, kk: (kk, j)),
                pl.BlockSpec((1, tn), lambda i, j, kk: (0, j)),
            ],
            out_specs=pl.BlockSpec((tm, tn), lambda i, j, kk: (i, j)),
            scratch_shapes=[pltpu.VMEM((tm, tn), jnp.float32)],
        ),
        compiler_params=pltpu.CompilerParams(
            dimension_semantics=("parallel", "parallel", "arbitrary"),
            vmem_limit_bytes=VMEM_LIMIT_BYTES),
    )(x, w, b)
    if (Mp, Np) != (M, N):
        out = out[:M, :N]
    return out


def maxpool2x2(x):
    """2x2/2 max pooling on NHWC via a Pallas kernel, R output rows per step."""
    N, H, W, C = x.shape
    Ho, Wo = H // 2, W // 2
    rows = N * Ho
    R = 1
    for d in range(1, min(rows, 32) + 1):
        if rows % d == 0:
            R = d
    xr = x.reshape(rows, 2, Wo, 2, C)
    out = pl.pallas_call(
        _maxpool2x2_kernel,
        out_shape=jax.ShapeDtypeStruct((rows, Wo, C), x.dtype),
        grid=(rows // R,),
        in_specs=[pl.BlockSpec((R, 2, Wo, 2, C), lambda i: (i, 0, 0, 0, 0))],
        out_specs=pl.BlockSpec((R, Wo, C), lambda i: (i, 0, 0)),
        compiler_params=pltpu.CompilerParams(
            dimension_semantics=("parallel",),
            vmem_limit_bytes=VMEM_LIMIT_BYTES),
    )(xr)
    return out.reshape(N, Ho, Wo, C)


def _im2col(x, k, stride, pad):
    """x: NHWC -> (N*Ho*Wo, k*k*Cin) patch matrix (feature order: di, dj, c)."""
    N, H, W, C = x.shape
    xp = jnp.pad(x, ((0, 0), (pad, pad), (pad, pad), (0, 0)))
    Ho = (H + 2 * pad - k) // stride + 1
    Wo = (W + 2 * pad - k) // stride + 1
    cols = []
    for di in range(k):
        for dj in range(k):
            cols.append(xp[:, di:di + stride * Ho:stride,
                            dj:dj + stride * Wo:stride, :])
    patches = jnp.concatenate(cols, axis=-1)     # (N, Ho, Wo, k*k*C)
    return patches.reshape(N * Ho * Wo, k * k * C), Ho, Wo


def conv2d_leaky(x, w, b, k, stride, pad):
    """Conv (NHWC activations, w: (k,k,Cin,Cout)) + LeakyReLU via Pallas matmul."""
    N, H, W, C = x.shape
    Cout = w.shape[-1]
    if k == 1 and stride == 1 and pad == 0:
        # 1x1 conv: no im2col, direct matmul on the channel dim.
        y = matmul_bias_act(x.reshape(N * H * W, C), w.reshape(C, Cout), b,
                            act="leaky")
        return y.reshape(N, H, W, Cout)
    patches, Ho, Wo = _im2col(x, k, stride, pad)
    y = matmul_bias_act(patches, w.reshape(-1, Cout), b, act="leaky")
    return y.reshape(N, Ho, Wo, Cout)


# ---------------------------------------------------------------------------
# Network definition (matches yolo_net.__init__)
# ---------------------------------------------------------------------------
ARCH = (
    [("conv", 3, 64, 7, 2, 3), ("pool",)] +
    [("conv", 64, 256, 3, 1, 1), ("pool",)] +
    [("conv", 256, 128, 1, 1, 0), ("conv", 128, 256, 3, 1, 1),
     ("conv", 256, 256, 1, 1, 0), ("conv", 256, 512, 3, 1, 1), ("pool",)] +
    [("conv", 512, 256, 1, 1, 0), ("conv", 256, 512, 3, 1, 1)] * 4 +
    [("conv", 512, 512, 1, 1, 0), ("conv", 512, 1024, 3, 1, 1), ("pool",)] +
    [("conv", 1024, 512, 1, 1, 0), ("conv", 512, 1024, 3, 1, 1)] * 2 +
    [("conv", 1024, 1024, 3, 1, 1), ("conv", 1024, 1024, 3, 2, 1)]
)

FC1_IN, FC1_OUT = 7 * 7 * 1024, 4096
FC2_IN, FC2_OUT = 4096, 7 * 7 * 11


def init_params(key):
    params = {"convs": [], "fc1": None, "fc2": None}
    for op in ARCH:
        if op[0] != "conv":
            continue
        _, cin, cout, k, _, _ = op
        key, sub = jax.random.split(key)
        std = (2.0 / (k * k * cin)) ** 0.5
        w = (std * jax.random.normal(sub, (k, k, cin, cout), jnp.bfloat16))
        b = jnp.zeros((cout,), jnp.float32)
        params["convs"].append((w.astype(jnp.bfloat16), b))
    key, sub = jax.random.split(key)
    w1 = ((2.0 / FC1_IN) ** 0.5 *
          jax.random.normal(sub, (FC1_IN, FC1_OUT), jnp.bfloat16))
    params["fc1"] = (w1.astype(jnp.bfloat16), jnp.zeros((FC1_OUT,), jnp.float32))
    key, sub = jax.random.split(key)
    w2 = ((1.0 / FC2_IN) ** 0.5 *
          jax.random.normal(sub, (FC2_IN, FC2_OUT), jnp.bfloat16))
    params["fc2"] = (w2.astype(jnp.bfloat16), jnp.zeros((FC2_OUT,), jnp.float32))
    return params


def yolo_forward(params, x_nchw):
    # NCHW -> NHWC bf16 for the conv trunk.
    x = jnp.transpose(x_nchw, (0, 2, 3, 1)).astype(jnp.bfloat16)
    conv_idx = 0
    for op in ARCH:
        if op[0] == "conv":
            _, cin, cout, k, s, p = op
            w, b = params["convs"][conv_idx]
            conv_idx += 1
            x = conv2d_leaky(x, w, b, k, s, p)
        else:
            x = maxpool2x2(x)
    # Flatten exactly like PyTorch `input.view(N, -1)` on an NCHW tensor.
    N = x.shape[0]
    x = jnp.transpose(x, (0, 3, 1, 2)).reshape(N, -1)      # (N, 1024*7*7)
    w1, b1 = params["fc1"]
    x = matmul_bias_act(x, w1, b1, act="leaky")             # Linear + LeakyReLU
    w2, b2 = params["fc2"]
    x = matmul_bias_act(x, w2, b2, act="sigmoid",
                        out_dtype=jnp.float32)              # Linear + Sigmoid
    return x.reshape(-1, 11, 7, 7)


if __name__ == "__main__":
    key = jax.random.PRNGKey(0)
    pkey, xkey = jax.random.split(key)
    params = init_params(pkey)
    # The architecture's FC layer (7*7*1024 inputs) pins the spatial size to
    # 448x448; batch is kept at 1 to stay as small as the module allows.
    x = jax.random.normal(xkey, (1, 3, 448, 448), jnp.float32)
    out = yolo_forward(params, x)
    out = jax.block_until_ready(out)
    assert out.shape == (1, 11, 7, 7), out.shape
    assert bool(jnp.all(jnp.isfinite(out)))
    assert bool(jnp.all((out >= 0.0) & (out <= 1.0)))       # sigmoid range
    print("KERNEL_OK")
</pallas_src>

<mosaic_0001>
module attributes {stable_mosaic.version = 11 : i64} {
  func.func @_matmul_bias_act_kernel(%arg0: i32, %arg1: i32, %arg2: i32, %arg3: memref<512x147xbf16, #tpu.memory_space<vmem>>, %arg4: memref<147x64xbf16, #tpu.memory_space<vmem>>, %arg5: memref<1x64xf32, #tpu.memory_space<vmem>>, %arg6: memref<512x64xbf16, #tpu.memory_space<vmem>>, %arg7: memref<512x64xf32, #tpu.memory_space<vmem>>) attributes {dimension_semantics = [#tpu.dimension_semantics<parallel>, #tpu.dimension_semantics<parallel>, #tpu.dimension_semantics<arbitrary>], iteration_bounds = array<i64: 98, 1, 1>, scalar_prefetch = 0 : i64, scratch_operands = 1 : i64, tpu.core_type = #tpu.core_type<tc>, window_params = [{transform_indices = @transform_0, window_bounds = array<i64: 512, 147>}, {transform_indices = @transform_1, window_bounds = array<i64: 147, 64>}, {transform_indices = @transform_2, window_bounds = array<i64: 1, 64>}, {transform_indices = @transform_3, window_bounds = array<i64: 512, 64>}]} {
    %c0_i32 = arith.constant 0 : i32
    %0 = arith.cmpi eq, %arg2, %c0_i32 : i32
    %1 = arith.extui %0 : i1 to i32
    %c0_i32_0 = arith.constant 0 : i32
    %2 = arith.cmpi ne, %1, %c0_i32_0 : i32
    scf.if %2 {
      %cst_10 = arith.constant 0.000000e+00 : f32
      %12 = vector.broadcast %cst_10 : f32 to vector<512x64xf32>
      %c0_11 = arith.constant 0 : index
      %c0_12 = arith.constant 0 : index
      %13 = vector.load %arg7[%c0_11, %c0_12] : memref<512x64xf32, #tpu.memory_space<vmem>>, vector<512x64xf32>
      tpu.vector_store %arg7[%c0_11, %c0_12], %12 {strides = array<i32>} : memref<512x64xf32, #tpu.memory_space<vmem>>, vector<512x64xf32>,
    } else {
    }
    %c0 = arith.constant 0 : index
    %c0_1 = arith.constant 0 : index
    %3 = vector.load %arg7[%c0, %c0_1] : memref<512x64xf32, #tpu.memory_space<vmem>>, vector<512x64xf32>
    %c0_2 = arith.constant 0 : index
    %c0_3 = arith.constant 0 : index
    %4 = vector.load %arg3[%c0_2, %c0_3] : memref<512x147xbf16, #tpu.memory_space<vmem>>, vector<512x147xbf16>
    %c0_4 = arith.constant 0 : index
    %c0_5 = arith.constant 0 : index
    %5 = vector.load %arg4[%c0_4, %c0_5] : memref<147x64xbf16, #tpu.memory_space<vmem>>, vector<147x64xbf16>
    %cst = arith.constant dense<0.000000e+00> : vector<512x64xf32>
    %6 = tpu.matmul %4, %5, %cst {dimension_numbers = #tpu.dot_dimension_numbers<[1], [0], [0], [1], [0, 0, 1, 1], [], []>} : vector<512x147xbf16>, vector<147x64xbf16>, vector<512x64xf32> -> vector<512x64xf32>
    %7 = arith.addf %3, %6 : vector<512x64xf32>
    %c0_6 = arith.constant 0 : index
    %c0_7 = arith.constant 0 : index
    %8 = vector.load %arg7[%c0_6, %c0_7] : memref<512x64xf32, #tpu.memory_space<vmem>>, vector<512x64xf32>
    tpu.vector_store %arg7[%c0_6, %c0_7], %7 {strides = array<i32>} : memref<512x64xf32, #tpu.memory_space<vmem>>, vector<512x64xf32>,
    %c0_i32_8 = arith.constant 0 : i32
    %9 = arith.cmpi eq, %arg2, %c0_i32_8 : i32
    %10 = arith.extui %9 : i1 to i32
    %c0_i32_9 = arith.constant 0 : i32
    %11 = arith.cmpi ne, %10, %c0_i32_9 : i32
    scf.if %11 {
      %c0_10 = arith.constant 0 : index
      %c0_11 = arith.constant 0 : index
      %12 = vector.load %arg7[%c0_10, %c0_11] : memref<512x64xf32, #tpu.memory_space<vmem>>, vector<512x64xf32>
      %c0_12 = arith.constant 0 : index
      %c0_13 = arith.constant 0 : index
      %13 = vector.load %arg5[%c0_12, %c0_13] : memref<1x64xf32, #tpu.memory_space<vmem>>, vector<1x64xf32>
      %14 = vector.broadcast %13 : vector<1x64xf32> to vector<512x64xf32>
      %15 = arith.addf %12, %14 : vector<512x64xf32>
      %cst_14 = arith.constant 0.000000e+00 : f32
      %16 = vector.broadcast %cst_14 : f32 to vector<512x64xf32>
      %17 = arith.cmpf ogt, %15, %16 : vector<512x64xf32>
      %cst_15 = arith.constant 0.00999999977 : f32
      %18 = vector.broadcast %cst_15 : f32 to vector<512x64xf32>
      %19 = arith.mulf %18, %15 : vector<512x64xf32>
      %20 = arith.select %17, %15, %19 : vector<512x64xi1>, vector<512x64xf32>
      %21 = arith.truncf %20 : vector<512x64xf32> to vector<512x64xbf16>
      %c0_16 = arith.constant 0 : index
      %c0_17 = arith.constant 0 : index
      %22 = vector.load %arg6[%c0_16, %c0_17] : memref<512x64xbf16, #tpu.memory_space<vmem>>, vector<512x64xbf16>
      tpu.vector_store %arg6[%c0_16, %c0_17], %21 {strides = array<i32>} : memref<512x64xbf16, #tpu.memory_space<vmem>>, vector<512x64xbf16>,
    } else {
    }
    return
  }
  func.func @transform_0(%arg0: i32, %arg1: i32, %arg2: i32) -> (i32, i32) {
    %c0_i32 = arith.constant 0 : i32
    return %arg0, %arg2 : i32, i32
  }
  func.func @transform_1(%arg0: i32, %arg1: i32, %arg2: i32) -> (i32, i32) {
    %c0_i32 = arith.constant 0 : i32
    return %arg2, %arg1 : i32, i32
  }
  func.func @transform_2(%arg0: i32, %arg1: i32, %arg2: i32) -> (i32, i32) {
    %c0_i32 = arith.constant 0 : i32
    %c0_i32_0 = arith.constant 0 : i32
    return %c0_i32, %arg1 : i32, i32
  }
  func.func @transform_3(%arg0: i32, %arg1: i32, %arg2: i32) -> (i32, i32) {
    %c0_i32 = arith.constant 0 : i32
    return %arg0, %arg1 : i32, i32
  }
}

</mosaic_0001>

<bundles_post_ra>
// kernel: tpu_custom_call.1
= control target key start
LH: loop header
LB: loop body
LE: loop exit
PB: predicated region body
PF: predicated region fallthrough
CT: control target
= control target key end

     0   :  { %8 = vsyncpa [#allocation4], 0  ;;  %s3346_s0 = inlined_call_operand.vmem [shape: bf16[50176,147], index: 0, kind: input, shape index: {}]   ;;  %s3347_s1 = inlined_call_operand.vmem [shape: bf16[147,64], index: 1, kind: input, shape index: {}]   ;;  %s3348_s2 = inlined_call_operand.vmem [shape: f32[1,64], index: 2, kind: input, shape index: {}]   ;;  %s3349_s3 = inlined_call_operand.hbm [shape: bf16[50176,64], index: 3, kind: output, shape index: {}]  }
   0x1   :  { %10 = vsyncpa [#allocation4 + $0x1], 0  ;;  %s2666_s12 = smov 0   ;;  %s2668_s13 = smov 0  }
   0x2   :  { %s2670_s14 = smov 0   ;;  %s2672_s15 = smov 0  }
   0x3   :  { %s2674_s16 = smov 0   ;;  %s2676_s17 = smov 0  }
   0x4 LB: > { %s2120_s18 = sadd.s32 4294967295, %s2638_s17   ;;  %s2121_s19 = sadd.s32 4294967294, %s2638_s17   ;;  %s2638_s17 = sphi %s2676_s17, %s16_s17   ;;  %s2634_s16 = sphi %s2674_s16, %s3356_s16   ;;  %s2630_s15 = sphi %s2672_s15, %s3355_s15   ;;  %s2626_s14 = sphi %s2670_s14, %s3354_s14   ;;  %s2622_s13 = sphi %s2668_s13, %s3353_s13   ;;  %s2618_s12 = sphi %s2666_s12, %s3352_s12  }
   0x5   : > { %s35_s20 = sadd.s32 1, %s2634_s16  ;;  %s126_s21 = sadd.s32 1, %s2626_s14 }
   0x6   : > { %p37_p0 = scmp.ge.s32.totalorder %s35_s20, 98  ;;  %p136_p1 = scmp.ne.s32.totalorder %s2626_s14, %s2622_s13 }
   0x7   : > { %p137_p2 = scmp.eq.s32.totalorder %s2120_s18, 97  ;;  %p142_p3 = scmp.ne.s32.totalorder %s2622_s13, %s2618_s12 }
   0x8   : > { %s3358_s20 = smov (%p37_p0, %s35_s20), 0  ;;  %p143_p5 = scmp.eq.s32.totalorder %s2121_s19, 97 }
   0x9   : > { %p2706_p4 = por %p137_p2, %p136_p1  ;;  %s121_s23 = ssub.s32 %s2634_s16, %s3358_s20 }
   0xa   : > { %p2126_p6 = scmp.ge.s32.totalorder %s2638_s17, 1  ;;  %p124_p7 = scmp.eq.s32.totalorder %s121_s23, 0 }
   0xb   : > { %p2713_p8 = por %p143_p5, %p142_p3  ;;  %p194_p9 = scmp.lt.s32.totalorder %s2638_s17, 99 }
   0xc   : > { %s2719_s25 = scalar_select %p124_p7, %s2626_s14, %s126_s21  }
   0xd   : > { %p195_p10 = pnand %p2126_p6, %p194_p9 }
   0xe   : > { %v2453_v0 = vld [vmem:[%s3347_s1] sm:$0xff] (!%p195_p10)   ;;  %v2640_v1 = vmov (!%p195_p10), 0   ;;  %v2454_v2 = vld [vmem:[%s3347_s1 + $0x8] sm:$0xff] (!%p195_p10)   ;;  %v2455_v3 = vld [vmem:[%s3347_s1 + $0x10] sm:$0xff] (!%p195_p10)   ;;  %s2128_s5 = sshll.u32 (!%p195_p10), %s2630_s15, 6  ;;  %vm821_vm0 = vcmask (!%p195_p10), 154624  }
   0xf   : > { %198 = sbr.rel (%p195_p10) target bundleno = 424 (0x1a8), region = 32  ;;  %925 = vmatprep.subr.bf16.mxu0 (!%p195_p10), %v2640_v1  ;;  %2373 = vmatprep.subr.bf16.mxu1 (!%p195_p10), %v2640_v1  ;;  %p236_p11 = scmp.lt.s32.totalorder (!%p195_p10), %s2128_s5, 6271  ;;  %v2456_v4 = vld [vmem:[%s3347_s1 + $0x18] sm:$0xff] (!%p195_p10)   ;;  %v2457_v5 = vld [vmem:[%s3347_s1 + $0x20] sm:$0xff] (!%p195_p10)   ;;  %v2458_v8 = vld [vmem:[%s3347_s1 + $0x28] sm:$0xff] (!%p195_p10)   ;;  %vm918_vm1 = vcmask (!%p195_p10), 1040384  }
  0x10   : > { %926 = vmatpush1.bf16.msra.mxu0 (!%p195_p10), %v2453_v0  ;;  %2383 = vmatpush1.bf16.msra.mxu1 (!%p195_p10), %v2453_v0  ;;  %v2459_v9 = vld [vmem:[%s3347_s1 + $0x30] sm:$0xff] (!%p195_p10)   ;;  %v2460_v10 = vld [vmem:[%s3347_s1 + $0x38] sm:$0xff] (!%p195_p10)   ;;  %vm919_vm2 = vcmask (!%p195_p10), 1041408   ;;  %v2641_v11 = vmov (!%p195_p10), 65535   ;;  %v2461_v13 = vld [vmem:[%s3347_s1 + $0x40] sm:$0xff] (!%p195_p10)   ;;  %vm264_vm3 = vcmask (!%p195_p10), 523264  }
  0x11   : > { %927 = vmatprep.subr.bf16.mxu0 (!%p195_p10), %v2640_v1  ;;  %2374 = vmatprep.subr.bf16.mxu1 (!%p195_p10), %v2640_v1  ;;  %v920_v12 = vsel (!%p195_p10), %vm918_vm1, 4294967295, %v2641_v11  ;;  %v2462_v14 = vld [vmem:[%s3347_s1 + $0x48] ss:$0 sps:$4 sm:$0x33] (!%p195_p10)   ;;  %v2642_v19 = vmov (!%p195_p10), 0.0   ;;  %s231_s9 = sand.u32 (!%p195_p10), 1, %s2622_s13  }
  0x12   : > { %v921_v15 = vsel (!%p195_p10), %vm919_vm2, %v920_v12, 0  ;;  %265 = vst.msk [vmem:[#allocation2] sm:$0xff] (!%p195_p10), %vm264_vm3, %v2642_v19  ;;  %266 = vst.msk [vmem:[#allocation2 + $0x8] sm:$0xff] (!%p195_p10), %vm264_vm3, %v2642_v19  ;;  %s2127_s10 = sshll.u32 (!%p195_p10), %s231_s9, 8  ;;  %vm1929_vm6 = vcmask (!%p195_p10), 519168   ;;  %s2372_s21 = sshll.u32 (!%p195_p10), %s2630_s15, 12 }
  0x13   : > { %v2779_v16 = vand.u32 (!%p195_p10), %v2462_v14, %v921_v15  ;;  %267 = vst.msk [vmem:[#allocation2 + $0x10] sm:$0xff] (!%p195_p10), %vm264_vm3, %v2642_v19  ;;  %268 = vst.msk [vmem:[#allocation2 + $0x18] sm:$0xff] (!%p195_p10), %vm264_vm3, %v2642_v19  ;;  %s3290_s28 = scalar_lea.hbm (!%p195_p10), %s3349_s3, %s2372_s21  ;;  %s3300_s15 = scalar_lea.sflag (!%p195_p10), [#allocation4], %s231_s9 }
  0x14   : > { %928 = vmatpush1.bf16.msra.mxu0 (!%p195_p10), %v2454_v2  ;;  %2384 = vmatpush1.bf16.msra.mxu1 (!%p195_p10), %v2454_v2  ;;  %269 = vst.msk [vmem:[#allocation2 + $0x20] sm:$0xff] (!%p195_p10), %vm264_vm3, %v2642_v19  ;;  %270 = vst.msk [vmem:[#allocation2 + $0x28] sm:$0xff] (!%p195_p10), %vm264_vm3, %v2642_v19  ;;  %s2643_s30 = smov (!%p195_p10), [#allocation3]  }
  0x15   : > { %929 = vmatprep.subr.bf16.mxu0 (!%p195_p10), %v2640_v1  ;;  %2375 = vmatprep.subr.bf16.mxu1 (!%p195_p10), %v2640_v1  ;;  %271 = vst.msk [vmem:[#allocation2 + $0x30] sm:$0xff] (!%p195_p10), %vm264_vm3, %v2642_v19  ;;  %272 = vst.msk [vmem:[#allocation2 + $0x38] sm:$0xff] (!%p195_p10), %vm264_vm3, %v2642_v19  ;;  %s2564_s4 = sshll.u32 (!%p195_p10), %s2643_s30, 4  ;;  %s2565_s4 = int_to_ptr.vmem [resolvable:$false] %s2564_s4 }
  0x16   : > { %s3360_s5 = smov (!%p236_p11, %s2128_s5), 6271  ;;  %273 = vst.msk [vmem:[#allocation2 + $0x40] sm:$0xff] %vm264_vm3, %v2642_v19  ;;  %274 = vst.msk [vmem:[#allocation2 + $0x48] sm:$0xff] %vm264_vm3, %v2642_v19 }
  0x17   : > { %s2307_s8 = sshll.u32 %s3360_s5, 3  ;;  %275 = vst.msk [vmem:[#allocation2 + $0x50] sm:$0xff] %vm264_vm3, %v2642_v19  ;;  %276 = vst.msk [vmem:[#allocation2 + $0x58] sm:$0xff] %vm264_vm3, %v2642_v19  ;;  %s2566_s5 = scalar_lea.vmem %s2565_s4, 8192 }
  0x18   : > { %930 = vmatpush1.bf16.msra.mxu0 %v2455_v3  ;;  %2385 = vmatpush1.bf16.msra.mxu1 %v2455_v3  ;;  %s2745_s11 = scalar_lea.vmem %s3346_s0, %s2307_s8  ;;  %277 = vst.msk [vmem:[#allocation2 + $0x60] sm:$0xff] %vm264_vm3, %v2642_v19  ;;  %278 = vst.msk [vmem:[#allocation2 + $0x68] sm:$0xff] %vm264_vm3, %v2642_v19 }
  0x19   : > { %931 = vmatprep.subr.bf16.mxu0 %v2640_v1  ;;  %2376 = vmatprep.subr.bf16.mxu1 %v2640_v1  ;;  %v2465_v6 = vld [vmem:[%s2745_s11 + $0x4] ss:$8 sps:$4 sm:$0xff]   ;;  %v2784_v17 = vld [vmem:[%s2745_s11] ss:$8 sps:$4 sm:$0xff]   ;;  %279 = vst.msk [vmem:[#allocation2 + $0x70] sm:$0xff] %vm264_vm3, %v2642_v19  ;;  %280 = vst.msk [vmem:[#allocation2 + $0x78] sm:$0xff] %vm264_vm3, %v2642_v19 }
  0x1a   : > { %v2468_v7 = vld [vmem:[%s2745_s11 + $0x104] ss:$8 sps:$4 sm:$0xff]   ;;  %2205 = vmatprep.mubr.msk.bf16.mxu0 %vm821_vm0, %v2465_v6  ;;  %v2787_v18 = vld [vmem:[%s2745_s11 + $0x100] ss:$8 sps:$4 sm:$0xff]   ;;  %281 = vst.msk [vmem:[#allocation2 + $0x80] sm:$0xff] %vm264_vm3, %v2642_v19  ;;  %282 = vst.msk [vmem:[#allocation2 + $0x88] sm:$0xff] %vm264_vm3, %v2642_v19 }
  0x1b   : > { %2221 = vmatprep.mubr.msk.bf16.mxu1 %vm821_vm0, %v2468_v7  ;;  %283 = vst.msk [vmem:[#allocation2 + $0x90] sm:$0xff] %vm264_vm3, %v2642_v19  ;;  %284 = vst.msk [vmem:[#allocation2 + $0x98] sm:$0xff] %vm264_vm3, %v2642_v19  ;;  %v2469_v20 = vld [vmem:[%s2745_s11 + $0x14] ss:$8 sps:$4 sm:$0xff]   ;;  %v2473_v22 = vld [vmem:[%s2745_s11 + $0x10] ss:$8 sps:$4 sm:$0xff]  }
  0x1c   : > { %932 = vmatpush1.bf16.msra.mxu0 %v2456_v4  ;;  %2386 = vmatpush1.bf16.msra.mxu1 %v2456_v4  ;;  %285 = vst.msk [vmem:[#allocation2 + $0xa0] sm:$0xff] %vm264_vm3, %v2642_v19  ;;  %286 = vst.msk [vmem:[#allocation2 + $0xa8] sm:$0xff] %vm264_vm3, %v2642_v19  ;;  %v2471_v21 = vld [vmem:[%s2745_s11 + $0x114] ss:$8 sps:$4 sm:$0xff]   ;;  %v2474_v23 = vld [vmem:[%s2745_s11 + $0x110] ss:$8 sps:$4 sm:$0xff]  }
  0x1d   : > { %933 = vmatprep.subr.bf16.mxu0 %v2640_v1  ;;  %2377 = vmatprep.subr.bf16.mxu1 %v2640_v1  ;;  %287 = vst.msk [vmem:[#allocation2 + $0xb0] sm:$0xff] %vm264_vm3, %v2642_v19  ;;  %288 = vst.msk [vmem:[#allocation2 + $0xb8] sm:$0xff] %vm264_vm3, %v2642_v19  ;;  %v2475_v24 = vld [vmem:[%s2745_s11 + $0x24] ss:$8 sps:$4 sm:$0xff]   ;;  %v2479_v26 = vld [vmem:[%s2745_s11 + $0x20] ss:$8 sps:$4 sm:$0xff]  }
  0x1e   : > { %289 = vst.msk [vmem:[#allocation2 + $0xc0] sm:$0xff] %vm264_vm3, %v2642_v19  ;;  %290 = vst.msk [vmem:[#allocation2 + $0xc8] sm:$0xff] %vm264_vm3, %v2642_v19  ;;  %v2477_v25 = vld [vmem:[%s2745_s11 + $0x124] ss:$8 sps:$4 sm:$0xff]   ;;  %v2480_v27 = vld [vmem:[%s2745_s11 + $0x120] ss:$8 sps:$4 sm:$0xff]  }
  0x1f   : > { %291 = vst.msk [vmem:[#allocation2 + $0xd0] sm:$0xff] %vm264_vm3, %v2642_v19  ;;  %292 = vst.msk [vmem:[#allocation2 + $0xd8] sm:$0xff] %vm264_vm3, %v2642_v19  ;;  %v2481_v28 = vld [vmem:[%s2745_s11 + $0x34] ss:$8 sps:$4 sm:$0xff]   ;;  %v2485_v30 = vld [vmem:[%s2745_s11 + $0x30] ss:$8 sps:$4 sm:$0xff]  }
  0x20   : > { %934 = vmatpush1.bf16.msra.mxu0 %v2457_v5  ;;  %2387 = vmatpush1.bf16.msra.mxu1 %v2457_v5  ;;  %293 = vst.msk [vmem:[#allocation2 + $0xe0] sm:$0xff] %vm264_vm3, %v2642_v19  ;;  %294 = vst.msk [vmem:[#allocation2 + $0xe8] sm:$0xff] %vm264_vm3, %v2642_v19  ;;  %v2483_v29 = vld [vmem:[%s2745_s11 + $0x134] ss:$8 sps:$4 sm:$0xff]   ;;  %v2486_v31 = vld [vmem:[%s2745_s11 + $0x130] ss:$8 sps:$4 sm:$0xff]  }
  0x21   : > { %935 = vmatprep.subr.bf16.mxu0 %v2640_v1  ;;  %2378 = vmatprep.subr.bf16.mxu1 %v2640_v1  ;;  %295 = vst.msk [vmem:[#allocation2 + $0xf0] sm:$0xff] %vm264_vm3, %v2642_v19  ;;  %296 = vst.msk [vmem:[#allocation2 + $0xf8] sm:$0xff] %vm264_vm3, %v2642_v19  ;;  %v2487_v32 = vld [vmem:[%s2745_s11 + $0x44] ss:$8 sps:$4 sm:$0xff]   ;;  %v2491_v34 = vld [vmem:[%s2745_s11 + $0x40] ss:$8 sps:$4 sm:$0xff]  }
  0x22   : > { %297 = vst.msk [vmem:[#allocation2 + $0x100] sm:$0xff] %vm264_vm3, %v2642_v19  ;;  %298 = vst.msk [vmem:[#allocation2 + $0x108] sm:$0xff] %vm264_vm3, %v2642_v19  ;;  %v2489_v33 = vld [vmem:[%s2745_s11 + $0x144] ss:$8 sps:$4 sm:$0xff]   ;;  %v2492_v35 = vld [vmem:[%s2745_s11 + $0x140] ss:$8 sps:$4 sm:$0xff]  }
  0x23   : > { %299 = vst.msk [vmem:[#allocation2 + $0x110] sm:$0xff] %vm264_vm3, %v2642_v19  ;;  %300 = vst.msk [vmem:[#allocation2 + $0x118] sm:$0xff] %vm264_vm3, %v2642_v19  ;;  %v2493_v36 = vld [vmem:[%s2745_s11 + $0x54] ss:$8 sps:$4 sm:$0xff]   ;;  %v2497_v38 = vld [vmem:[%s2745_s11 + $0x50] ss:$8 sps:$4 sm:$0xff]  }
  0x24   : > { %936 = vmatpush1.bf16.msra.mxu0 %v2458_v8  ;;  %2388 = vmatpush1.bf16.msra.mxu1 %v2458_v8  ;;  %301 = vst.msk [vmem:[#allocation2 + $0x120] sm:$0xff] %vm264_vm3, %v2642_v19  ;;  %302 = vst.msk [vmem:[#allocation2 + $0x128] sm:$0xff] %vm264_vm3, %v2642_v19  ;;  %v2495_v37 = vld [vmem:[%s2745_s11 + $0x154] ss:$8 sps:$4 sm:$0xff]   ;;  %v2498_v39 = vld [vmem:[%s2745_s11 + $0x150] ss:$8 sps:$4 sm:$0xff]  }
  0x25   : > { %937 = vmatprep.subr.bf16.mxu0 %v2640_v1  ;;  %2379 = vmatprep.subr.bf16.mxu1 %v2640_v1  ;;  %303 = vst.msk [vmem:[#allocation2 + $0x130] sm:$0xff] %vm264_vm3, %v2642_v19  ;;  %304 = vst.msk [vmem:[#allocation2 + $0x138] sm:$0xff] %vm264_vm3, %v2642_v19  ;;  %v2499_v40 = vld [vmem:[%s2745_s11 + $0x64] ss:$8 sps:$4 sm:$0xff]   ;;  %v2503_v42 = vld [vmem:[%s2745_s11 + $0x60] ss:$8 sps:$4 sm:$0xff]  }
  0x26   : > { %305 = vst.msk [vmem:[#allocation2 + $0x140] sm:$0xff] %vm264_vm3, %v2642_v19  ;;  %306 = vst.msk [vmem:[#allocation2 + $0x148] sm:$0xff] %vm264_vm3, %v2642_v19  ;;  %v2501_v41 = vld [vmem:[%s2745_s11 + $0x164] ss:$8 sps:$4 sm:$0xff]   ;;  %v2504_v43 = vld [vmem:[%s2745_s11 + $0x160] ss:$8 sps:$4 sm:$0xff]  }
  0x27   : > { %307 = vst.msk [vmem:[#allocation2 + $0x150] sm:$0xff] %vm264_vm3, %v2642_v19  ;;  %308 = vst.msk [vmem:[#allocation2 + $0x158] sm:$0xff] %vm264_vm3, %v2642_v19  ;;  %v2505_v44 = vld [vmem:[%s2745_s11 + $0x74] ss:$8 sps:$4 sm:$0xff]   ;;  %v2509_v46 = vld [vmem:[%s2745_s11 + $0x70] ss:$8 sps:$4 sm:$0xff]  }
  0x28   : > { %938 = vmatpush1.bf16.msra.mxu0 %v2459_v9  ;;  %2389 = vmatpush1.bf16.msra.mxu1 %v2459_v9  ;;  %309 = vst.msk [vmem:[#allocation2 + $0x160] sm:$0xff] %vm264_vm3, %v2642_v19  ;;  %310 = vst.msk [vmem:[#allocation2 + $0x168] sm:$0xff] %vm264_vm3, %v2642_v19  ;;  %v2507_v45 = vld [vmem:[%s2745_s11 + $0x174] ss:$8 sps:$4 sm:$0xff]   ;;  %v2510_v47 = vld [vmem:[%s2745_s11 + $0x170] ss:$8 sps:$4 sm:$0xff]  }
  0x29   : > { %939 = vmatprep.subr.bf16.mxu0 %v2640_v1  ;;  %2380 = vmatprep.subr.bf16.mxu1 %v2640_v1  ;;  %311 = vst.msk [vmem:[#allocation2 + $0x170] sm:$0xff] %vm264_vm3, %v2642_v19  ;;  %312 = vst.msk [vmem:[#allocation2 + $0x178] sm:$0xff] %vm264_vm3, %v2642_v19  ;;  %v2511_v48 = vld [vmem:[%s2745_s11 + $0x84] ss:$8 sps:$4 sm:$0xff]   ;;  %v2515_v50 = vld [vmem:[%s2745_s11 + $0x80] ss:$8 sps:$4 sm:$0xff]  }
  0x2a   : > { %313 = vst.msk [vmem:[#allocation2 + $0x180] sm:$0xff] %vm264_vm3, %v2642_v19  ;;  %314 = vst.msk [vmem:[#allocation2 + $0x188] sm:$0xff] %vm264_vm3, %v2642_v19  ;;  %v2513_v49 = vld [vmem:[%s2745_s11 + $0x184] ss:$8 sps:$4 sm:$0xff]   ;;  %v2516_v51 = vld [vmem:[%s2745_s11 + $0x180] ss:$8 sps:$4 sm:$0xff]  }
  0x2b   : > { %315 = vst.msk [vmem:[#allocation2 + $0x190] sm:$0xff] %vm264_vm3, %v2642_v19  ;;  %316 = vst.msk [vmem:[#allocation2 + $0x198] sm:$0xff] %vm264_vm3, %v2642_v19  ;;  %v2517_v52 = vld [vmem:[%s2745_s11 + $0x94] ss:$8 sps:$4 sm:$0xff]   ;;  %v2521_v54 = vld [vmem:[%s2745_s11 + $0x90] ss:$8 sps:$4 sm:$0xff]  }
  0x2c   : > { %940 = vmatpush1.bf16.msra.mxu0 %v2460_v10  ;;  %2390 = vmatpush1.bf16.msra.mxu1 %v2460_v10  ;;  %317 = vst.msk [vmem:[#allocation2 + $0x1a0] sm:$0xff] %vm264_vm3, %v2642_v19  ;;  %318 = vst.msk [vmem:[#allocation2 + $0x1a8] sm:$0xff] %vm264_vm3, %v2642_v19  ;;  %v2519_v53 = vld [vmem:[%s2745_s11 + $0x194] ss:$8 sps:$4 sm:$0xff]   ;;  %v2522_v55 = vld [vmem:[%s2745_s11 + $0x190] ss:$8 sps:$4 sm:$0xff]  }
  0x2d   : > { %941 = vmatprep.subr.bf16.mxu0 %v2640_v1  ;;  %2381 = vmatprep.subr.bf16.mxu1 %v2640_v1  ;;  %319 = vst.msk [vmem:[#allocation2 + $0x1b0] sm:$0xff] %vm264_vm3, %v2642_v19  ;;  %320 = vst.msk [vmem:[#allocation2 + $0x1b8] sm:$0xff] %vm264_vm3, %v2642_v19  ;;  %v2523_v56 = vld [vmem:[%s2745_s11 + $0xa4] ss:$8 sps:$4 sm:$0xff]   ;;  %v2527_v58 = vld [vmem:[%s2745_s11 + $0xa0] ss:$8 sps:$4 sm:$0xff]  }
  0x2e   : > { %321 = vst.msk [vmem:[#allocation2 + $0x1c0] sm:$0xff] %vm264_vm3, %v2642_v19  ;;  %322 = vst.msk [vmem:[#allocation2 + $0x1c8] sm:$0xff] %vm264_vm3, %v2642_v19  ;;  %v2525_v57 = vld [vmem:[%s2745_s11 + $0x1a4] ss:$8 sps:$4 sm:$0xff]   ;;  %v2528_v59 = vld [vmem:[%s2745_s11 + $0x1a0] ss:$8 sps:$4 sm:$0xff]  }
  0x2f   : > { %323 = vst.msk [vmem:[#allocation2 + $0x1d0] sm:$0xff] %vm264_vm3, %v2642_v19  ;;  %324 = vst.msk [vmem:[#allocation2 + $0x1d8] sm:$0xff] %vm264_vm3, %v2642_v19  ;;  %v2529_v60 = vld [vmem:[%s2745_s11 + $0xb4] ss:$8 sps:$4 sm:$0xff]   ;;  %v2533_v62 = vld [vmem:[%s2745_s11 + $0xb0] ss:$8 sps:$4 sm:$0xff]  }
  0x30   : > { %942 = vmatpush1.bf16.msra.mxu0 %v2461_v13  ;;  %2391 = vmatpush1.bf16.msra.mxu1 %v2461_v13  ;;  %325 = vst.msk [vmem:[#allocation2 + $0x1e0] sm:$0xff] %vm264_vm3, %v2642_v19  ;;  %326 = vst.msk [vmem:[#allocation2 + $0x1e8] sm:$0xff] %vm264_vm3, %v2642_v19  ;;  %v2531_v61 = vld [vmem:[%s2745_s11 + $0x1b4] ss:$8 sps:$4 sm:$0xff]   ;;  %v2534_v63 = vld [vmem:[%s2745_s11 + $0x1b0] ss:$8 sps:$4 sm:$0xff]  }
  0x31   : > { %943 = vmatprep.subr.bf16.mxu0 %v2640_v1  ;;  %2382 = vmatprep.subr.bf16.mxu1 %v2640_v1  ;;  %327 = vst.msk [vmem:[#allocation2 + $0x1f0] sm:$0xff] %vm264_vm3, %v2642_v19  ;;  %328 = vst.msk [vmem:[#allocation2 + $0x1f8] sm:$0xff] %vm264_vm3, %v2642_v19  ;;  %v2535_v0 = vld [vmem:[%s2745_s11 + $0xc4] ss:$8 sps:$4 sm:$0xff]   ;;  %v2539_v2 = vld [vmem:[%s2745_s11 + $0xc0] ss:$8 sps:$4 sm:$0xff]  }
  0x32   : > { %v2537_v1 = vld [vmem:[%s2745_s11 + $0x1c4] ss:$8 sps:$4 sm:$0xff]   ;;  %v2540_v3 = vld [vmem:[%s2745_s11 + $0x1c0] ss:$8 sps:$4 sm:$0xff]   ;;  %v2541_v4 = vld [vmem:[%s2745_s11 + $0xd4] ss:$8 sps:$4 sm:$0xff]  }
  0x33   : > { %v2543_v5 = vld [vmem:[%s2745_s11 + $0x1d4] ss:$8 sps:$4 sm:$0xff]   ;;  %v2545_v6 = vld [vmem:[%s2745_s11 + $0xd0] ss:$8 sps:$4 sm:$0xff]   ;;  %v2547_v8 = vld [vmem:[%s2745_s11 + $0xe4] ss:$8 sps:$4 sm:$0xff]  }
  0x34   : > { %944 = vmatpush1.bf16.msra.mxu0 %v2779_v16  ;;  %2392 = vmatpush1.bf16.msra.mxu1 %v2779_v16  ;;  %v2546_v7 = vld [vmem:[%s2745_s11 + $0x1d0] ss:$8 sps:$4 sm:$0xff]   ;;  %v2549_v9 = vld [vmem:[%s2745_s11 + $0x1e4] ss:$8 sps:$4 sm:$0xff]   ;;  %v2551_v10 = vld [vmem:[%s2745_s11 + $0xe0] ss:$8 sps:$4 sm:$0xff]  }
  0x35   : > { %v2552_v11 = vld [vmem:[%s2745_s11 + $0x1e0] ss:$8 sps:$4 sm:$0xff]   ;;  %v2553_v12 = vld [vmem:[%s2745_s11 + $0xf4] ss:$8 sps:$4 sm:$0xff]   ;;  %v2557_v14 = vld [vmem:[%s2745_s11 + $0xf0] ss:$8 sps:$4 sm:$0xff]  }
  0x36   : > { %v2555_v13 = vld [vmem:[%s2745_s11 + $0x1f4] ss:$8 sps:$4 sm:$0xff]   ;;  %v2558_v15 = vld [vmem:[%s2745_s11 + $0x1f0] ss:$8 sps:$4 sm:$0xff]   ;;  %v329_v16 = vld [vmem:[#allocation2] sm:$0xff]  ;;  %s3031_s11 = scalar_lea.vmem [#allocation3], %s2127_s10 }
  0x37   : > { %958 = vmatmul.mubr.bf16.vlgmr.msra.gmra.mrb[0].mxu0 %v2784_v17  ;;  %1086 = vmatmul.mubr.bf16.vlgmr.msra.gmra.mrb[0].mxu1 %v2787_v18  ;;  %v361_v17 = vld [vmem:[#allocation2 + $0x100] sm:$0xff]  ;;  %s2009_s23 = sshll.u32 %s3031_s11, 4  ;;  %s3292_s23 = int_to_ptr.vmem [resolvable:$true] %s2009_s23 }
  0x38   : > { %2206 = vmatprep.mubr.msk.bf16.mxu0 %vm821_vm0, %v2469_v20  ;;  %2222 = vmatprep.mubr.msk.bf16.mxu1 %vm821_vm0, %v2471_v21  ;;  %v330_v20 = vld [vmem:[#allocation2 + $0x8] sm:$0xff]  ;;  %s2560_s29 = scalar_lea.vmem %s3292_s23, 4096  ;;  %p2567_p1 = scmp.lt.s32.totalorder %s3292_s23, %s2565_s4 }
  0x39   : > { %v362_v21 = vld [vmem:[#allocation2 + $0x108] sm:$0xff]  ;;  %p2561_p12 = scmp.ne.s32.totalorder %s3292_s23, %s2560_s29  ;;  %p2568_p2 = scmp.lt.s32.totalorder %s2566_s5, %s2560_s29 }
  0x3b   : > { %p2562_p13 = pnand %p2561_p12, %p2706_p4  ;;  %p2569_p3 = por %p2568_p2, %p2567_p1 }
  0x3d   : > { %p2563_p0 = pneg %p2562_p13 }
  0x3f   : > { %966 = vmatmul.mubr.bf16.gmra.mrb[4].mxu0 %v2473_v22  ;;  %1094 = vmatmul.mubr.bf16.gmra.mrb[4].mxu1 %v2474_v23  ;;  %p2570_p5 = pnand %p2569_p3, %p2563_p0 }
  0x40   : > { %2207 = vmatprep.mubr.msk.bf16.mxu0 %vm821_vm0, %v2475_v24  ;;  %2223 = vmatprep.mubr.msk.bf16.mxu1 %vm821_vm0, %v2477_v25 }
  0x47   : > { %974 = vmatmul.mubr.bf16.gmra.mrb[8].mxu0 %v2479_v26  ;;  %1102 = vmatmul.mubr.bf16.gmra.mrb[8].mxu1 %v2480_v27 }
  0x48   : > { %2208 = vmatprep.mubr.msk.bf16.mxu0 %vm821_vm0, %v2481_v28  ;;  %2224 = vmatprep.mubr.msk.bf16.mxu1 %vm821_vm0, %v2483_v29 }
  0x4f   : > { %982 = vmatmul.mubr.bf16.gmra.mrb[12].mxu0 %v2485_v30  ;;  %1110 = vmatmul.mubr.bf16.gmra.mrb[12].mxu1 %v2486_v31 }
  0x50   : > { %2209 = vmatprep.mubr.msk.bf16.mxu0 %vm821_vm0, %v2487_v32  ;;  %2225 = vmatprep.mubr.msk.bf16.mxu1 %vm821_vm0, %v2489_v33  ;;  %v331_v32 = vld [vmem:[#allocation2 + $0x10] sm:$0xff] }
  0x51   : > { %v363_v33 = vld [vmem:[#allocation2 + $0x110] sm:$0xff] }
  0x57   : > { %990 = vmatmul.mubr.bf16.gmra.mrb[16].mxu0 %v2491_v34  ;;  %1118 = vmatmul.mubr.bf16.gmra.mrb[16].mxu1 %v2492_v35  ;;  %v3018_v34 = vld [vmem:[%s3348_s2] ss:$0 sm:$0xff] }
  0x58   : > { %2210 = vmatprep.mubr.msk.bf16.mxu0 %vm821_vm0, %v2493_v36  ;;  %2226 = vmatprep.mubr.msk.bf16.mxu1 %vm821_vm0, %v2495_v37  ;;  %v332_v37 = vld [vmem:[#allocation2 + $0x18] sm:$0xff] }
  0x5f   : > { %998 = vmatmul.mubr.bf16.gmra.mrb[20].mxu0 %v2497_v38  ;;  %1126 = vmatmul.mubr.bf16.gmra.mrb[20].mxu1 %v2498_v39  ;;  %v364_v38 = vld [vmem:[#allocation2 + $0x118] sm:$0xff] }
  0x60   : > { %2211 = vmatprep.mubr.msk.bf16.mxu0 %vm821_vm0, %v2499_v40  ;;  %2227 = vmatprep.mubr.msk.bf16.mxu1 %vm821_vm0, %v2501_v41 }
  0x67   : > { %1006 = vmatmul.mubr.bf16.gmra.mrb[24].mxu0 %v2503_v42  ;;  %1134 = vmatmul.mubr.bf16.gmra.mrb[24].mxu1 %v2504_v43 }
  0x68   : > { %2212 = vmatprep.mubr.msk.bf16.mxu0 %vm821_vm0, %v2505_v44  ;;  %2228 = vmatprep.mubr.msk.bf16.mxu1 %vm821_vm0, %v2507_v45 }
  0x6f   : > { %1014 = vmatmul.mubr.bf16.gmra.mrb[28].mxu0 %v2509_v46  ;;  %1142 = vmatmul.mubr.bf16.gmra.mrb[28].mxu1 %v2510_v47 }
  0x70   : > { %2213 = vmatprep.mubr.msk.bf16.mxu0 %vm821_vm0, %v2511_v48  ;;  %2229 = vmatprep.mubr.msk.bf16.mxu1 %vm821_vm0, %v2513_v49 }
  0x77   : > { %1022 = vmatmul.mubr.bf16.gmra.mrb[32].mxu0 %v2515_v50  ;;  %1150 = vmatmul.mubr.bf16.gmra.mrb[32].mxu1 %v2516_v51 }
  0x78   : > { %2214 = vmatprep.mubr.msk.bf16.mxu0 %vm821_vm0, %v2517_v52  ;;  %2230 = vmatprep.mubr.msk.bf16.mxu1 %vm821_vm0, %v2519_v53 }
  0x7f   : > { %1030 = vmatmul.mubr.bf16.gmra.mrb[36].mxu0 %v2521_v54  ;;  %1158 = vmatmul.mubr.bf16.gmra.mrb[36].mxu1 %v2522_v55 }
  0x80   : > { %2215 = vmatprep.mubr.msk.bf16.mxu0 %vm821_vm0, %v2523_v56  ;;  %2231 = vmatprep.mubr.msk.bf16.mxu1 %vm821_vm0, %v2525_v57 }
  0x87   : > { %1038 = vmatmul.mubr.bf16.gmra.mrb[40].mxu0 %v2527_v58  ;;  %1166 = vmatmul.mubr.bf16.gmra.mrb[40].mxu1 %v2528_v59  ;;  %v333_v59 = vld [vmem:[#allocation2 + $0x20] sm:$0xff] }
  0x88   : > { %2216 = vmatprep.mubr.msk.bf16.mxu0 %vm821_vm0, %v2529_v60  ;;  %2232 = vmatprep.mubr.msk.bf16.mxu1 %vm821_vm0, %v2531_v61  ;;  %v365_v60 = vld [vmem:[#allocation2 + $0x120] sm:$0xff] }
  0x8f   : > { %1046 = vmatmul.mubr.bf16.gmra.mrb[44].mxu0 %v2533_v62  ;;  %1174 = vmatmul.mubr.bf16.gmra.mrb[44].mxu1 %v2534_v63 }
  0x90   : > { %2217 = vmatprep.mubr.msk.bf16.mxu0 %vm821_vm0, %v2535_v0  ;;  %2233 = vmatprep.mubr.msk.bf16.mxu1 %vm821_vm0, %v2537_v1 }
  0x97   : > { %1054 = vmatmul.mubr.bf16.gmra.mrb[48].mxu0 %v2539_v2  ;;  %1182 = vmatmul.mubr.bf16.gmra.mrb[48].mxu1 %v2540_v3 }
  0x98   : > { %2218 = vmatprep.mubr.msk.bf16.mxu0 %vm821_vm0, %v2541_v4  ;;  %2234 = vmatprep.mubr.msk.bf16.mxu1 %vm821_vm0, %v2543_v5  ;;  %v334_v4 = vld [vmem:[#allocation2 + $0x28] sm:$0xff] }
  0x9f   : > { %1062 = vmatmul.mubr.bf16.gmra.mrb[52].mxu0 %v2545_v6  ;;  %1190 = vmatmul.mubr.bf16.gmra.mrb[52].mxu1 %v2546_v7 }
  0xa0   : > { %2219 = vmatprep.mubr.msk.bf16.mxu0 %vm821_vm0, %v2547_v8  ;;  %2235 = vmatprep.mubr.msk.bf16.mxu1 %vm821_vm0, %v2549_v9 }
  0xa7   : > { %1070 = vmatmul.mubr.bf16.gmra.mrb[56].mxu0 %v2551_v10  ;;  %1198 = vmatmul.mubr.bf16.gmra.mrb[56].mxu1 %v2552_v11  ;;  %v366_v10 = vld [vmem:[#allocation2 + $0x128] sm:$0xff] }
  0xa8   : > { %2220 = vmatprep.mubr.msk.bf16.mxu0 %vm821_vm0, %v2553_v12  ;;  %2236 = vmatprep.mubr.msk.bf16.mxu1 %vm821_vm0, %v2555_v13 }
  0xaf   : > { %1078 = vmatmul.mubr.bf16.gmra.mrb[60].mxu0 %v2557_v14  ;;  %1206 = vmatmul.mubr.bf16.gmra.mrb[60].mxu1 %v2558_v15 }
 0x10a   : > { %v959_v18 = vpop.f32.mrb[0].mxu0  ;;  %v1087_v19 = vpop.f32.mrb[0].mxu1 }
 0x10b   : > { %v1214_v22 = vadd.f32 %v959_v18, %v329_v16  ;;  %v1246_v23 = vadd.f32 %v1087_v19, %v361_v17  ;;  %v961_v24 = vpop.f32.mrb[1].mxu0  ;;  %v1089_v25 = vpop.f32.mrb[1].mxu1 }
 0x10c   : > { %v962_v26 = vpop.f32.mrb[2].mxu0  ;;  %v1090_v27 = vpop.f32.mrb[2].mxu1 }
 0x10d   : > { %1279 = vst.msk [vmem:[#allocation2] sm:$0xff] %vm264_vm3, %v1214_v22  ;;  %1311 = vst.msk [vmem:[#allocation2 + $0x100] sm:$0xff] %vm264_vm3, %v1246_v23  ;;  %v1215_v28 = vadd.f32 %v962_v26, %v330_v20  ;;  %v1247_v29 = vadd.f32 %v1090_v27, %v362_v21  ;;  %v964_v30 = vpop.f32.mrb[3].mxu0  ;;  %v1092_v31 = vpop.f32.mrb[3].mxu1 }
 0x10e   : > { %v335_v31 = vld [vmem:[#allocation2 + $0x30] sm:$0xff] }
 0x10f   : > { %1280 = vst.msk [vmem:[#allocation2 + $0x8] sm:$0xff] %vm264_vm3, %v1215_v28  ;;  %1312 = vst.msk [vmem:[#allocation2 + $0x108] sm:$0xff] %vm264_vm3, %v1247_v29 }
 0x112   : > { %v967_v35 = vpop.f32.mrb[4].mxu0  ;;  %v1095_v36 = vpop.f32.mrb[4].mxu1 }
 0x113   : > { %v1216_v39 = vadd.f32 %v967_v35, %v331_v32  ;;  %v1248_v40 = vadd.f32 %v1095_v36, %v363_v33  ;;  %v969_v41 = vpop.f32.mrb[5].mxu0  ;;  %v1097_v42 = vpop.f32.mrb[5].mxu1  ;;  %v367_v32 = vld [vmem:[#allocation2 + $0x130] sm:$0xff] }
 0x114   : > { %v1346_v43 = vld [vmem:[#allocation2] sm:$0xff]  ;;  %v970_v45 = vpop.f32.mrb[6].mxu0  ;;  %v1098_v46 = vpop.f32.mrb[6].mxu1  ;;  %v336_v41 = vld [vmem:[#allocation2 + $0x38] sm:$0xff] }
 0x115   : > { %v1378_v44 = vld [vmem:[#allocation2 + $0x100] sm:$0xff]  ;;  %v1417_v47 = vadd.f32 %v3018_v34, %v1346_v43  ;;  %1281 = vst.msk [vmem:[#allocation2 + $0x10] sm:$0xff] %vm264_vm3, %v1216_v39  ;;  %1313 = vst.msk [vmem:[#allocation2 + $0x110] sm:$0xff] %vm264_vm3, %v1248_v40  ;;  %v1217_v49 = vadd.f32 %v970_v45, %v332_v37  ;;  %v1249_v50 = vadd.f32 %v1098_v46, %v364_v38  ;;  %v972_v51 = vpop.f32.mrb[7].mxu0  ;;  %v1100_v52 = vpop.f32.mrb[7].mxu1 }
 0x116   : > { %v1449_v48 = vadd.f32 %v3018_v34, %v1378_v44  ;;  %v1347_v53 = vld [vmem:[#allocation2 + $0x8] sm:$0xff] }
 0x117   : > { %v1379_v54 = vld [vmem:[#allocation2 + $0x108] sm:$0xff]  ;;  %vm1481_vm4 = vcmp.gt.f32.partialorder %v1417_v47, 0.0  ;;  %v1545_v55 = vmul.f32 0.01, %v1417_v47  ;;  %1282 = vst.msk [vmem:[#allocation2 + $0x18] sm:$0xff] %vm264_vm3, %v1217_v49  ;;  %1314 = vst.msk [vmem:[#allocation2 + $0x118] sm:$0xff] %vm264_vm3, %v1249_v50  ;;  %v1418_v57 = vadd.f32 %v3018_v34, %v1347_v53 }
 0x118   : > { %vm1513_vm5 = vcmp.gt.f32.partialorder %v1449_v48, 0.0  ;;  %v1577_v56 = vmul.f32 0.01, %v1449_v48  ;;  %v1450_v58 = vadd.f32 %v3018_v34, %v1379_v54 }
 0x119   : > { %v1609_v61 = vsel %vm1481_vm4, %v1417_v47, %v1545_v55  ;;  %vm1482_vm7 = vcmp.gt.f32.partialorder %v1418_v57, 0.0  ;;  %v1546_v1 = vmul.f32 0.01, %v1418_v57  ;;  %v368_v47 = vld [vmem:[#allocation2 + $0x138] sm:$0xff] }
 0x11a   : > { %v1641_v62 = vsel %vm1513_vm5, %v1449_v48, %v1577_v56  ;;  %v2308_v63 = vpack.c.bf16 %v1609_v61, %v1609_v61  ;;  %v975_v2 = vpop.f32.mrb[8].mxu0  ;;  %v1103_v3 = vpop.f32.mrb[8].mxu1  ;;  %vm1514_vm8 = vcmp.gt.f32.partialorder %v1450_v58, 0.0  ;;  %v1578_v5 = vmul.f32 0.01, %v1450_v58 }
 0x11b   : > { %v2340_v0 = vpack.c.bf16 %v1641_v62, %v1641_v62  ;;  %v1218_v6 = vadd.f32 %v975_v2, %v333_v59  ;;  %v1250_v7 = vadd.f32 %v1103_v3, %v365_v60  ;;  %v977_v8 = vpop.f32.mrb[9].mxu0  ;;  %v1105_v9 = vpop.f32.mrb[9].mxu1  ;;  %v1610_v11 = vsel %vm1482_vm7, %v1418_v57, %v1546_v1 }
 0x11c   : > { %1930 = vst.msk [vmem:[%s3031_s11] sm:$0xf] %vm1929_vm6, %v2308_v63  ;;  %v1348_v12 = vld [vmem:[#allocation2 + $0x10] sm:$0xff]  ;;  %v978_v14 = vpop.f32.mrb[10].mxu0  ;;  %v1106_v15 = vpop.f32.mrb[10].mxu1  ;;  %v2309_v16 = vpack.c.bf16 %v1610_v11, %v1610_v11  ;;  %v1642_v17 = vsel %vm1514_vm8, %v1450_v58, %v1578_v5 }
 0x11d   : > { %1962 = vst.msk [vmem:[%s3031_s11 + $0x80] sm:$0xf] %vm1929_vm6, %v2340_v0  ;;  %v1380_v13 = vld [vmem:[#allocation2 + $0x110] sm:$0xff]  ;;  %v1419_v18 = vadd.f32 %v3018_v34, %v1348_v12  ;;  %v980_v20 = vpop.f32.mrb[11].mxu0  ;;  %v1108_v21 = vpop.f32.mrb[11].mxu1  ;;  %v2341_v22 = vpack.c.bf16 %v1642_v17, %v1642_v17  ;;  %v1219_v25 = vadd.f32 %v978_v14, %v334_v4  ;;  %v1251_v26 = vadd.f32 %v1106_v15, %v366_v10  ;;  %v338_v12 = vld [vmem:[#allocation2 + $0x48] sm:$0xff] }
 0x11e   : > { %v1451_v19 = vadd.f32 %v3018_v34, %v1380_v13  ;;  %1283 = vst.msk [vmem:[#allocation2 + $0x20] sm:$0xff] %vm264_vm3, %v1218_v6  ;;  %1315 = vst.msk [vmem:[#allocation2 + $0x120] sm:$0xff] %vm264_vm3, %v1250_v7  ;;  %v1349_v23 = vld [vmem:[#allocation2 + $0x18] sm:$0xff]  ;;  %v337_v6 = vld [vmem:[#allocation2 + $0x40] sm:$0xff] }
 0x11f   : > { %v1381_v24 = vld [vmem:[#allocation2 + $0x118] sm:$0xff]  ;;  %1931 = vst.msk [vmem:[%s3031_s11 + $0x4] sm:$0xf] %vm1929_vm6, %v2309_v16  ;;  %vm1483_vm9 = vcmp.gt.f32.partialorder %v1419_v18, 0.0  ;;  %v1547_v27 = vmul.f32 0.01, %v1419_v18  ;;  %v1420_v29 = vadd.f32 %v3018_v34, %v1349_v23 }
 0x120   : > { %vm1515_vm10 = vcmp.gt.f32.partialorder %v1451_v19, 0.0  ;;  %v1579_v28 = vmul.f32 0.01, %v1451_v19  ;;  %1963 = vst.msk [vmem:[%s3031_s11 + $0x84] sm:$0xf] %vm1929_vm6, %v2341_v22  ;;  %v1452_v30 = vadd.f32 %v3018_v34, %v1381_v24  ;;  %v369_v7 = vld [vmem:[#allocation2 + $0x140] sm:$0xff] }
 0x121   : > { %1284 = vst.msk [vmem:[#allocation2 + $0x28] sm:$0xff] %vm264_vm3, %v1219_v25  ;;  %1316 = vst.msk [vmem:[#allocation2 + $0x128] sm:$0xff] %vm264_vm3, %v1251_v26  ;;  %v1611_v33 = vsel %vm1483_vm9, %v1419_v18, %v1547_v27  ;;  %vm1484_vm11 = vcmp.gt.f32.partialorder %v1420_v29, 0.0  ;;  %v1548_v38 = vmul.f32 0.01, %v1420_v29  ;;  %v370_v13 = vld [vmem:[#allocation2 + $0x148] sm:$0xff] }
 0x122   : > { %v1643_v35 = vsel %vm1515_vm10, %v1451_v19, %v1579_v28  ;;  %v2310_v36 = vpack.c.bf16 %v1611_v33, %v1611_v33  ;;  %v983_v39 = vpop.f32.mrb[12].mxu0  ;;  %v1111_v40 = vpop.f32.mrb[12].mxu1  ;;  %vm1516_vm12 = vcmp.gt.f32.partialorder %v1452_v30, 0.0  ;;  %v1580_v42 = vmul.f32 0.01, %v1452_v30 }
 0x123   : > { %v2342_v37 = vpack.c.bf16 %v1643_v35, %v1643_v35  ;;  %v1220_v43 = vadd.f32 %v983_v39, %v335_v31  ;;  %v1252_v44 = vadd.f32 %v1111_v40, %v367_v32  ;;  %v985_v45 = vpop.f32.mrb[13].mxu0  ;;  %v1113_v46 = vpop.f32.mrb[13].mxu1  ;;  %v1612_v48 = vsel %vm1484_vm11, %v1420_v29, %v1548_v38 }
 0x124   : > { %1932 = vst.msk [vmem:[%s3031_s11 + $0x8] sm:$0xf] %vm1929_vm6, %v2310_v36  ;;  %v986_v51 = vpop.f32.mrb[14].mxu0  ;;  %v1114_v52 = vpop.f32.mrb[14].mxu1  ;;  %v2311_v53 = vpack.c.bf16 %v1612_v48, %v1612_v48  ;;  %v1644_v54 = vsel %vm1516_vm12, %v1452_v30, %v1580_v42 }
 0x125   : > { %1964 = vst.msk [vmem:[%s3031_s11 + $0x88] sm:$0xf] %vm1929_vm6, %v2342_v37  ;;  %v1350_v49 = vld [vmem:[#allocation2 + $0x20] sm:$0xff]  ;;  %v988_v57 = vpop.f32.mrb[15].mxu0  ;;  %v1116_v58 = vpop.f32.mrb[15].mxu1  ;;  %v2343_v59 = vpack.c.bf16 %v1644_v54, %v1644_v54  ;;  %v1221_v60 = vadd.f32 %v986_v51, %v336_v41  ;;  %v1253_v61 = vadd.f32 %v1114_v52, %v368_v47 }
 0x126   : > { %v1382_v50 = vld [vmem:[#allocation2 + $0x120] sm:$0xff]  ;;  %v1421_v55 = vadd.f32 %v3018_v34, %v1350_v49  ;;  %1285 = vst.msk [vmem:[#allocation2 + $0x30] sm:$0xff] %vm264_vm3, %v1220_v43  ;;  %1317 = vst.msk [vmem:[#allocation2 + $0x130] sm:$0xff] %vm264_vm3, %v1252_v44  ;;  %v339_v43 = vld [vmem:[#allocation2 + $0x50] sm:$0xff] }
 0x127   : > { %v1453_v56 = vadd.f32 %v3018_v34, %v1382_v50  ;;  %1933 = vst.msk [vmem:[%s3031_s11 + $0xc] sm:$0xf] %vm1929_vm6, %v2311_v53  ;;  %1965 = vst.msk [vmem:[%s3031_s11 + $0x8c] sm:$0xf] %vm1929_vm6, %v2343_v59  ;;  %v371_v44 = vld [vmem:[#allocation2 + $0x150] sm:$0xff] }
 0x128   : > { %vm1485_vm13 = vcmp.gt.f32.partialorder %v1421_v55, 0.0  ;;  %v1549_v62 = vmul.f32 0.01, %v1421_v55  ;;  %v1351_v0 = vld [vmem:[#allocation2 + $0x28] sm:$0xff]  ;;  %1286 = vst.msk [vmem:[#allocation2 + $0x38] sm:$0xff] %vm264_vm3, %v1221_v60  ;;  %1318 = vst.msk [vmem:[#allocation2 + $0x138] sm:$0xff] %vm264_vm3, %v1253_v61 }
 0x129   : > { %vm1517_vm14 = vcmp.gt.f32.partialorder %v1453_v56, 0.0  ;;  %v1581_v63 = vmul.f32 0.01, %v1453_v56  ;;  %v1383_v1 = vld [vmem:[#allocation2 + $0x128] sm:$0xff]  ;;  %v1422_v4 = vadd.f32 %v3018_v34, %v1351_v0 }
 0x12a   : > { %v1613_v2 = vsel %vm1485_vm13, %v1421_v55, %v1549_v62  ;;  %v1454_v5 = vadd.f32 %v3018_v34, %v1383_v1  ;;  %v991_v10 = vpop.f32.mrb[16].mxu0  ;;  %v1119_v11 = vpop.f32.mrb[16].mxu1  ;;  %v340_v55 = vld [vmem:[#allocation2 + $0x58] sm:$0xff] }
 0x12b   : > { %v1645_v3 = vsel %vm1517_vm14, %v1453_v56, %v1581_v63  ;;  %v2312_v8 = vpack.c.bf16 %v1613_v2, %v1613_v2  ;;  %vm1486_vm15 = vcmp.gt.f32.partialorder %v1422_v4, 0.0  ;;  %v1550_v14 = vmul.f32 0.01, %v1422_v4  ;;  %v993_v20 = vpop.f32.mrb[17].mxu0  ;;  %v1121_v21 = vpop.f32.mrb[17].mxu1  ;;  %v372_v56 = vld [vmem:[#allocation2 + $0x158] sm:$0xff] }
 0x12c   : > { %v2344_v9 = vpack.c.bf16 %v1645_v3, %v1645_v3  ;;  %vm1518_vm0 = vcmp.gt.f32.partialorder %v1454_v5, 0.0  ;;  %v1582_v15 = vmul.f32 0.01, %v1454_v5  ;;  %v1222_v18 = vadd.f32 %v991_v10, %v337_v6  ;;  %v994_v26 = vpop.f32.mrb[18].mxu0  ;;  %v1122_v27 = vpop.f32.mrb[18].mxu1  ;;  %v374_v20 = vld [vmem:[#allocation2 + $0x168] sm:$0xff] }
 0x12d   : > { %1934 = vst.msk [vmem:[%s3031_s11 + $0x10] sm:$0xf] %vm1929_vm6, %v2312_v8  ;;  %v1352_v16 = vld [vmem:[#allocation2 + $0x30] sm:$0xff]  ;;  %v1254_v19 = vadd.f32 %v1119_v11, %v369_v7  ;;  %v1614_v22 = vsel %vm1486_vm15, %v1422_v4, %v1550_v14  ;;  %v1223_v30 = vadd.f32 %v994_v26, %v338_v12  ;;  %v1255_v31 = vadd.f32 %v1122_v27, %v370_v13  ;;  %v996_v32 = vpop.f32.mrb[19].mxu0  ;;  %v1124_v33 = vpop.f32.mrb[19].mxu1  ;;  %v341_v13 = vld [vmem:[#allocation2 + $0x60] sm:$0xff] }
 0x12e   : > { %1966 = vst.msk [vmem:[%s3031_s11 + $0x90] sm:$0xf] %vm1929_vm6, %v2344_v9  ;;  %v1384_v17 = vld [vmem:[#allocation2 + $0x130] sm:$0xff]  ;;  %v1646_v23 = vsel %vm1518_vm0, %v1454_v5, %v1582_v15  ;;  %v1423_v24 = vadd.f32 %v3018_v34, %v1352_v16  ;;  %v2313_v28 = vpack.c.bf16 %v1614_v22, %v1614_v22  ;;  %v373_v14 = vld [vmem:[#allocation2 + $0x160] sm:$0xff] }
 0x12f   : > { %v1455_v25 = vadd.f32 %v3018_v34, %v1384_v17  ;;  %v2345_v29 = vpack.c.bf16 %v1646_v23, %v1646_v23  ;;  %1287 = vst.msk [vmem:[#allocation2 + $0x40] sm:$0xff] %vm264_vm3, %v1222_v18  ;;  %1319 = vst.msk [vmem:[#allocation2 + $0x140] sm:$0xff] %vm264_vm3, %v1254_v19  ;;  %v1353_v37 = vld [vmem:[#allocation2 + $0x38] sm:$0xff]  ;;  %v342_v19 = vld [vmem:[#allocation2 + $0x68] sm:$0xff] }
 0x130   : > { %vm1487_vm1 = vcmp.gt.f32.partialorder %v1423_v24, 0.0  ;;  %v1551_v35 = vmul.f32 0.01, %v1423_v24  ;;  %1935 = vst.msk [vmem:[%s3031_s11 + $0x14] sm:$0xf] %vm1929_vm6, %v2313_v28  ;;  %v1385_v38 = vld [vmem:[#allocation2 + $0x138] sm:$0xff]  ;;  %v1424_v41 = vadd.f32 %v3018_v34, %v1353_v37 }
 0x131   : > { %vm1519_vm2 = vcmp.gt.f32.partialorder %v1455_v25, 0.0  ;;  %v1583_v36 = vmul.f32 0.01, %v1455_v25  ;;  %1967 = vst.msk [vmem:[%s3031_s11 + $0x94] sm:$0xf] %vm1929_vm6, %v2345_v29  ;;  %v1456_v42 = vadd.f32 %v3018_v34, %v1385_v38 }
 0x132   : > { %1288 = vst.msk [vmem:[#allocation2 + $0x48] sm:$0xff] %vm264_vm3, %v1223_v30  ;;  %1320 = vst.msk [vmem:[#allocation2 + $0x148] sm:$0xff] %vm264_vm3, %v1255_v31  ;;  %v1615_v39 = vsel %vm1487_vm1, %v1423_v24, %v1551_v35  ;;  %v999_v47 = vpop.f32.mrb[20].mxu0  ;;  %v1127_v48 = vpop.f32.mrb[20].mxu1  ;;  %vm1488_vm4 = vcmp.gt.f32.partialorder %v1424_v41, 0.0 }
 0x133   : > { %v1647_v40 = vsel %vm1519_vm2, %v1455_v25, %v1583_v36  ;;  %v2314_v45 = vpack.c.bf16 %v1615_v39, %v1615_v39  ;;  %v1552_v49 = vmul.f32 0.01, %v1424_v41  ;;  %vm1520_vm5 = vcmp.gt.f32.partialorder %v1456_v42, 0.0  ;;  %v1001_v53 = vpop.f32.mrb[21].mxu0  ;;  %v1129_v54 = vpop.f32.mrb[21].mxu1 }
 0x134   : > { %v2346_v46 = vpack.c.bf16 %v1647_v40, %v1647_v40  ;;  %v1584_v50 = vmul.f32 0.01, %v1456_v42  ;;  %v1224_v51 = vadd.f32 %v999_v47, %v339_v43  ;;  %v1256_v52 = vadd.f32 %v1127_v48, %v371_v44  ;;  %v1002_v61 = vpop.f32.mrb[22].mxu0  ;;  %v1130_v62 = vpop.f32.mrb[22].mxu1  ;;  %v343_v44 = vld [vmem:[#allocation2 + $0x70] sm:$0xff] }
 0x135   : > { %1936 = vst.msk [vmem:[%s3031_s11 + $0x18] sm:$0xf] %vm1929_vm6, %v2314_v45  ;;  %v1616_v57 = vsel %vm1488_vm4, %v1424_v41, %v1552_v49  ;;  %v1004_v3 = vpop.f32.mrb[23].mxu0  ;;  %v1132_v4 = vpop.f32.mrb[23].mxu1  ;;  %v1225_v7 = vadd.f32 %v1002_v61, %v340_v55  ;;  %v1257_v8 = vadd.f32 %v1130_v62, %v372_v56  ;;  %v375_v45 = vld [vmem:[#allocation2 + $0x170] sm:$0xff] }
 0x136   : > { %1968 = vst.msk [vmem:[%s3031_s11 + $0x98] sm:$0xf] %vm1929_vm6, %v2346_v46  ;;  %v1648_v58 = vsel %vm1520_vm5, %v1456_v42, %v1584_v50  ;;  %v1354_v59 = vld [vmem:[#allocation2 + $0x40] sm:$0xff]  ;;  %v2315_v63 = vpack.c.bf16 %v1616_v57, %v1616_v57 }
 0x137   : > { %v1386_v60 = vld [vmem:[#allocation2 + $0x140] sm:$0xff]  ;;  %v2347_v0 = vpack.c.bf16 %v1648_v58, %v1648_v58  ;;  %v1425_v1 = vadd.f32 %v3018_v34, %v1354_v59  ;;  %1289 = vst.msk [vmem:[#allocation2 + $0x50] sm:$0xff] %vm264_vm3, %v1224_v51  ;;  %1321 = vst.msk [vmem:[#allocation2 + $0x150] sm:$0xff] %vm264_vm3, %v1256_v52 }
 0x138   : > { %v1457_v2 = vadd.f32 %v3018_v34, %v1386_v60  ;;  %1937 = vst.msk [vmem:[%s3031_s11 + $0x1c] sm:$0xf] %vm1929_vm6, %v2315_v63 }
 0x139   : > { %v1355_v5 = vld [vmem:[#allocation2 + $0x48] sm:$0xff]  ;;  %1969 = vst.msk [vmem:[%s3031_s11 + $0x9c] sm:$0xf] %vm1929_vm6, %v2347_v0  ;;  %vm1489_vm7 = vcmp.gt.f32.partialorder %v1425_v1, 0.0  ;;  %v1553_v9 = vmul.f32 0.01, %v1425_v1 }
 0x13a   : > { %v1387_v6 = vld [vmem:[#allocation2 + $0x148] sm:$0xff]  ;;  %vm1521_vm8 = vcmp.gt.f32.partialorder %v1457_v2, 0.0  ;;  %v1585_v10 = vmul.f32 0.01, %v1457_v2  ;;  %v1426_v11 = vadd.f32 %v3018_v34, %v1355_v5  ;;  %1290 = vst.msk [vmem:[#allocation2 + $0x58] sm:$0xff] %vm264_vm3, %v1225_v7  ;;  %1322 = vst.msk [vmem:[#allocation2 + $0x158] sm:$0xff] %vm264_vm3, %v1257_v8 }
 0x13b   : > { %v1458_v12 = vadd.f32 %v3018_v34, %v1387_v6  ;;  %v1617_v15 = vsel %vm1489_vm7, %v1425_v1, %v1553_v9  ;;  %v1007_v17 = vpop.f32.mrb[24].mxu0  ;;  %v1135_v18 = vpop.f32.mrb[24].mxu1 }
 0x13c   : > { %v1649_v16 = vsel %vm1521_vm8, %v1457_v2, %v1585_v10  ;;  %v2316_v21 = vpack.c.bf16 %v1617_v15, %v1617_v15  ;;  %vm1490_vm9 = vcmp.gt.f32.partialorder %v1426_v11, 0.0  ;;  %v1554_v23 = vmul.f32 0.01, %v1426_v11  ;;  %v1009_v24 = vpop.f32.mrb[25].mxu0  ;;  %v1137_v25 = vpop.f32.mrb[25].mxu1  ;;  %v344_v10 = vld [vmem:[#allocation2 + $0x78] sm:$0xff] }
 0x13d   : > { %v2348_v22 = vpack.c.bf16 %v1649_v16, %v1649_v16  ;;  %vm1522_vm10 = vcmp.gt.f32.partialorder %v1458_v12, 0.0  ;;  %v1586_v26 = vmul.f32 0.01, %v1458_v12  ;;  %v1226_v27 = vadd.f32 %v1007_v17, %v341_v13  ;;  %v1010_v29 = vpop.f32.mrb[26].mxu0  ;;  %v1138_v30 = vpop.f32.mrb[26].mxu1  ;;  %v376_v17 = vld [vmem:[#allocation2 + $0x178] sm:$0xff] }
 0x13e   : > { %v1258_v28 = vadd.f32 %v1135_v18, %v373_v14  ;;  %1938 = vst.msk [vmem:[%s3031_s11 + $0x20] sm:$0xf] %vm1929_vm6, %v2316_v21  ;;  %v1618_v31 = vsel %vm1490_vm9, %v1426_v11, %v1554_v23  ;;  %v1356_v32 = vld [vmem:[#allocation2 + $0x50] sm:$0xff]  ;;  %v1227_v35 = vadd.f32 %v1010_v29, %v342_v19  ;;  %v1259_v36 = vadd.f32 %v1138_v30, %v374_v20  ;;  %v1012_v37 = vpop.f32.mrb[27].mxu0  ;;  %v1140_v38 = vpop.f32.mrb[27].mxu1  ;;  %v345_v18 = vld [vmem:[#allocation2 + $0x80] sm:$0xff] }
 0x13f   : > { %1970 = vst.msk [vmem:[%s3031_s11 + $0xa0] sm:$0xf] %vm1929_vm6, %v2348_v22  ;;  %v1388_v33 = vld [vmem:[#allocation2 + $0x150] sm:$0xff]  ;;  %v2317_v39 = vpack.c.bf16 %v1618_v31, %v1618_v31  ;;  %v1650_v40 = vsel %vm1522_vm10, %v1458_v12, %v1586_v26  ;;  %v1427_v41 = vadd.f32 %v3018_v34, %v1356_v32  ;;  %v377_v19 = vld [vmem:[#allocation2 + $0x180] sm:$0xff]  ;;  %v346_v30 = vld [vmem:[#allocation2 + $0x88] sm:$0xff] }
 0x140   : > { %v1459_v42 = vadd.f32 %v3018_v34, %v1388_v33  ;;  %1291 = vst.msk [vmem:[#allocation2 + $0x60] sm:$0xff] %vm264_vm3, %v1226_v27  ;;  %1323 = vst.msk [vmem:[#allocation2 + $0x160] sm:$0xff] %vm264_vm3, %v1258_v28  ;;  %v2349_v43 = vpack.c.bf16 %v1650_v40, %v1650_v40  ;;  %v378_v31 = vld [vmem:[#allocation2 + $0x188] sm:$0xff] }
 0x141   : > { %1292 = vst.msk [vmem:[#allocation2 + $0x68] sm:$0xff] %vm264_vm3, %v1227_v35  ;;  %1324 = vst.msk [vmem:[#allocation2 + $0x168] sm:$0xff] %vm264_vm3, %v1259_v36  ;;  %vm1491_vm11 = vcmp.gt.f32.partialorder %v1427_v41, 0.0  ;;  %v1555_v46 = vmul.f32 0.01, %v1427_v41  ;;  %v1357_v48 = vld [vmem:[#allocation2 + $0x58] sm:$0xff] }
 0x142   : > { %1939 = vst.msk [vmem:[%s3031_s11 + $0x24] sm:$0xf] %vm1929_vm6, %v2317_v39  ;;  %vm1523_vm12 = vcmp.gt.f32.partialorder %v1459_v42, 0.0  ;;  %v1587_v47 = vmul.f32 0.01, %v1459_v42  ;;  %v1389_v49 = vld [vmem:[#allocation2 + $0x158] sm:$0xff]  ;;  %v1428_v52 = vadd.f32 %v3018_v34, %v1357_v48 }
 0x143   : > { %1971 = vst.msk [vmem:[%s3031_s11 + $0xa4] sm:$0xf] %vm1929_vm6, %v2349_v43  ;;  %v1619_v50 = vsel %vm1491_vm11, %v1427_v41, %v1555_v46  ;;  %v1460_v53 = vadd.f32 %v3018_v34, %v1389_v49  ;;  %v1015_v54 = vpop.f32.mrb[28].mxu0  ;;  %v1143_v55 = vpop.f32.mrb[28].mxu1 }
 0x144   : > { %v1651_v51 = vsel %vm1523_vm12, %v1459_v42, %v1587_v47  ;;  %v2318_v56 = vpack.c.bf16 %v1619_v50, %v1619_v50  ;;  %v1228_v58 = vadd.f32 %v1015_v54, %v343_v44  ;;  %v1260_v59 = vadd.f32 %v1143_v55, %v375_v45  ;;  %v1017_v60 = vpop.f32.mrb[29].mxu0  ;;  %v1145_v61 = vpop.f32.mrb[29].mxu1  ;;  %v347_v55 = vld [vmem:[#allocation2 + $0x90] sm:$0xff] }
 0x145   : > { %v2350_v57 = vpack.c.bf16 %v1651_v51, %v1651_v51  ;;  %vm1492_vm13 = vcmp.gt.f32.partialorder %v1428_v52, 0.0  ;;  %v1556_v62 = vmul.f32 0.01, %v1428_v52  ;;  %vm1524_vm14 = vcmp.gt.f32.partialorder %v1460_v53, 0.0  ;;  %v1018_v2 = vpop.f32.mrb[30].mxu0  ;;  %v1146_v3 = vpop.f32.mrb[30].mxu1 }
 0x146   : > { %v1588_v63 = vmul.f32 0.01, %v1460_v53  ;;  %1940 = vst.msk [vmem:[%s3031_s11 + $0x28] sm:$0xf] %vm1929_vm6, %v2318_v56  ;;  %v1020_v11 = vpop.f32.mrb[31].mxu0  ;;  %v1148_v12 = vpop.f32.mrb[31].mxu1  ;;  %v1229_v26 = vadd.f32 %v1018_v2, %v344_v10  ;;  %v1261_v27 = vadd.f32 %v1146_v3, %v376_v17 }
 0x147   : > { %1972 = vst.msk [vmem:[%s3031_s11 + $0xa8] sm:$0xf] %vm1929_vm6, %v2350_v57  ;;  %v1358_v0 = vld [vmem:[#allocation2 + $0x60] sm:$0xff]  ;;  %v1620_v4 = vsel %vm1492_vm13, %v1428_v52, %v1556_v62  ;;  %v379_v56 = vld [vmem:[#allocation2 + $0x190] sm:$0xff] }
 0x148   : > { %v1390_v1 = vld [vmem:[#allocation2 + $0x160] sm:$0xff]  ;;  %1293 = vst.msk [vmem:[#allocation2 + $0x70] sm:$0xff] %vm264_vm3, %v1228_v58  ;;  %1325 = vst.msk [vmem:[#allocation2 + $0x170] sm:$0xff] %vm264_vm3, %v1260_v59  ;;  %v1652_v5 = vsel %vm1524_vm14, %v1460_v53, %v1588_v63  ;;  %v1429_v6 = vadd.f32 %v3018_v34, %v1358_v0  ;;  %v1359_v8 = vld [vmem:[#allocation2 + $0x68] sm:$0xff]  ;;  %v2319_v13 = vpack.c.bf16 %v1620_v4, %v1620_v4 }
 0x149   : > { %v1461_v7 = vadd.f32 %v3018_v34, %v1390_v1  ;;  %v1391_v9 = vld [vmem:[#allocation2 + $0x168] sm:$0xff]  ;;  %v2351_v14 = vpack.c.bf16 %v1652_v5, %v1652_v5  ;;  %v1430_v15 = vadd.f32 %v3018_v34, %v1359_v8  ;;  %1294 = vst.msk [vmem:[#allocation2 + $0x78] sm:$0xff] %vm264_vm3, %v1229_v26  ;;  %1326 = vst.msk [vmem:[#allocation2 + $0x178] sm:$0xff] %vm264_vm3, %v1261_v27  ;;  %v348_v63 = vld [vmem:[#allocation2 + $0x98] sm:$0xff] }
 0x14a   : > { %v1462_v16 = vadd.f32 %v3018_v34, %v1391_v9  ;;  %vm1493_vm15 = vcmp.gt.f32.partialorder %v1429_v6, 0.0  ;;  %v1557_v20 = vmul.f32 0.01, %v1429_v6  ;;  %1941 = vst.msk [vmem:[%s3031_s11 + $0x2c] sm:$0xf] %vm1929_vm6, %v2319_v13  ;;  %v1023_v28 = vpop.f32.mrb[32].mxu0 }
 0x14b   : > { %vm1525_vm0 = vcmp.gt.f32.partialorder %v1461_v7, 0.0  ;;  %v1589_v21 = vmul.f32 0.01, %v1461_v7  ;;  %1973 = vst.msk [vmem:[%s3031_s11 + $0xac] sm:$0xf] %vm1929_vm6, %v2351_v14  ;;  %vm1494_vm1 = vcmp.gt.f32.partialorder %v1430_v15, 0.0  ;;  %v1230_v43 = vadd.f32 %v1023_v28, %v345_v18 }
 0x14c   : > { %v1558_v22 = vmul.f32 0.01, %v1430_v15  ;;  %vm1526_vm2 = vcmp.gt.f32.partialorder %v1462_v16, 0.0  ;;  %v1590_v23 = vmul.f32 0.01, %v1462_v16  ;;  %v1621_v24 = vsel %vm1493_vm15, %v1429_v6, %v1557_v20  ;;  %v1151_v29 = vpop.f32.mrb[32].mxu1 }
 0x14d   : > { %v1653_v25 = vsel %vm1525_vm0, %v1461_v7, %v1589_v21  ;;  %v2320_v32 = vpack.c.bf16 %v1621_v24, %v1621_v24  ;;  %v1025_v37 = vpop.f32.mrb[33].mxu0  ;;  %v1153_v38 = vpop.f32.mrb[33].mxu1  ;;  %v1262_v44 = vadd.f32 %v1151_v29, %v377_v19  ;;  %1295 = vst.msk [vmem:[#allocation2 + $0x80] sm:$0xff] %vm264_vm3, %v1230_v43  ;;  %v380_v0 = vld [vmem:[#allocation2 + $0x198] sm:$0xff] }
 0x14e   : > { %v2352_v33 = vpack.c.bf16 %v1653_v25, %v1653_v25  ;;  %v1622_v35 = vsel %vm1494_vm1, %v1430_v15, %v1558_v22  ;;  %v1654_v36 = vsel %vm1526_vm2, %v1462_v16, %v1590_v23  ;;  %v1026_v45 = vpop.f32.mrb[34].mxu0  ;;  %v1154_v46 = vpop.f32.mrb[34].mxu1 }
 0x14f   : > { %v2321_v39 = vpack.c.bf16 %v1622_v35, %v1622_v35  ;;  %v2353_v40 = vpack.c.bf16 %v1654_v36, %v1654_v36  ;;  %v1360_v41 = vld [vmem:[#allocation2 + $0x70] sm:$0xff]  ;;  %1942 = vst.msk [vmem:[%s3031_s11 + $0x30] sm:$0xf] %vm1929_vm6, %v2320_v32  ;;  %v1231_v49 = vadd.f32 %v1026_v45, %v346_v30  ;;  %v1263_v50 = vadd.f32 %v1154_v46, %v378_v31  ;;  %v1028_v51 = vpop.f32.mrb[35].mxu0  ;;  %v1156_v52 = vpop.f32.mrb[35].mxu1  ;;  %v349_v30 = vld [vmem:[#allocation2 + $0xa0] sm:$0xff] }
 0x150   : > { %v1392_v42 = vld [vmem:[#allocation2 + $0x170] sm:$0xff]  ;;  %1974 = vst.msk [vmem:[%s3031_s11 + $0xb0] sm:$0xf] %vm1929_vm6, %v2352_v33  ;;  %v1431_v47 = vadd.f32 %v3018_v34, %v1360_v41  ;;  %v1361_v1 = vld [vmem:[#allocation2 + $0x78] sm:$0xff]  ;;  %v381_v31 = vld [vmem:[#allocation2 + $0x1a0] sm:$0xff] }
 0x151   : > { %v1463_v48 = vadd.f32 %v3018_v34, %v1392_v42  ;;  %1943 = vst.msk [vmem:[%s3031_s11 + $0x34] sm:$0xf] %vm1929_vm6, %v2321_v39  ;;  %1975 = vst.msk [vmem:[%s3031_s11 + $0xb4] sm:$0xf] %vm1929_vm6, %v2353_v40  ;;  %v1393_v2 = vld [vmem:[#allocation2 + $0x178] sm:$0xff]  ;;  %v1432_v7 = vadd.f32 %v3018_v34, %v1361_v1  ;;  %v350_v39 = vld [vmem:[#allocation2 + $0xa8] sm:$0xff] }
 0x152   : > { %1327 = vst.msk [vmem:[#allocation2 + $0x180] sm:$0xff] %vm264_vm3, %v1262_v44  ;;  %vm1495_vm4 = vcmp.gt.f32.partialorder %v1431_v47, 0.0  ;;  %v1559_v53 = vmul.f32 0.01, %v1431_v47  ;;  %1296 = vst.msk [vmem:[#allocation2 + $0x88] sm:$0xff] %vm264_vm3, %v1231_v49  ;;  %v1031_v61 = vpop.f32.mrb[36].mxu0  ;;  %v1464_v8 = vadd.f32 %v3018_v34, %v1393_v2 }
 0x153   : > { %vm1527_vm5 = vcmp.gt.f32.partialorder %v1463_v48, 0.0  ;;  %v1591_v54 = vmul.f32 0.01, %v1463_v48  ;;  %1328 = vst.msk [vmem:[#allocation2 + $0x188] sm:$0xff] %vm264_vm3, %v1263_v50  ;;  %v1159_v62 = vpop.f32.mrb[36].mxu1  ;;  %v1232_v3 = vadd.f32 %v1031_v61, %v347_v55  ;;  %v1033_v5 = vpop.f32.mrb[37].mxu0 }
 0x154   : > { %v1623_v57 = vsel %vm1495_vm4, %v1431_v47, %v1559_v53  ;;  %v1264_v4 = vadd.f32 %v1159_v62, %v379_v56  ;;  %v1161_v6 = vpop.f32.mrb[37].mxu1  ;;  %v1034_v9 = vpop.f32.mrb[38].mxu0  ;;  %v1362_v11 = vld [vmem:[#allocation2 + $0x80] sm:$0xff]  ;;  %vm1496_vm7 = vcmp.gt.f32.partialorder %v1432_v7, 0.0  ;;  %v1560_v17 = vmul.f32 0.01, %v1432_v7 }
 0x155   : > { %v1655_v58 = vsel %vm1527_vm5, %v1463_v48, %v1591_v54  ;;  %v2322_v59 = vpack.c.bf16 %v1623_v57, %v1623_v57  ;;  %v1162_v10 = vpop.f32.mrb[38].mxu1  ;;  %1297 = vst.msk [vmem:[#allocation2 + $0x90] sm:$0xff] %vm264_vm3, %v1232_v3  ;;  %v1233_v13 = vadd.f32 %v1034_v9, %v348_v63  ;;  %v1036_v15 = vpop.f32.mrb[39].mxu0  ;;  %vm1528_vm8 = vcmp.gt.f32.partialorder %v1464_v8, 0.0  ;;  %v382_v53 = vld [vmem:[#allocation2 + $0x1a8] sm:$0xff]  ;;  %v383_v5 = vld [vmem:[#allocation2 + $0x1b0] sm:$0xff] }
 0x156   : > { %v2354_v60 = vpack.c.bf16 %v1655_v58, %v1655_v58  ;;  %1329 = vst.msk [vmem:[#allocation2 + $0x190] sm:$0xff] %vm264_vm3, %v1264_v4  ;;  %v1265_v14 = vadd.f32 %v1162_v10, %v380_v0  ;;  %v1164_v16 = vpop.f32.mrb[39].mxu1  ;;  %v1592_v18 = vmul.f32 0.01, %v1464_v8  ;;  %v1433_v19 = vadd.f32 %v3018_v34, %v1362_v11  ;;  %v351_v4 = vld [vmem:[#allocation2 + $0xb0] sm:$0xff] }
 0x157   : > { %1944 = vst.msk [vmem:[%s3031_s11 + $0x38] sm:$0xf] %vm1929_vm6, %v2322_v59  ;;  %v1624_v23 = vsel %vm1496_vm7, %v1432_v7, %v1560_v17 }
 0x158   : > { %1976 = vst.msk [vmem:[%s3031_s11 + $0xb8] sm:$0xf] %vm1929_vm6, %v2354_v60  ;;  %v1656_v24 = vsel %vm1528_vm8, %v1464_v8, %v1592_v18  ;;  %v2323_v27 = vpack.c.bf16 %v1624_v23, %v1624_v23  ;;  %vm1497_vm9 = vcmp.gt.f32.partialorder %v1433_v19, 0.0  ;;  %v1561_v29 = vmul.f32 0.01, %v1433_v19 }
 0x159   : > { %v1394_v12 = vld [vmem:[#allocation2 + $0x180] sm:$0xff]  ;;  %v1363_v21 = vld [vmem:[#allocation2 + $0x88] sm:$0xff]  ;;  %1298 = vst.msk [vmem:[#allocation2 + $0x98] sm:$0xff] %vm264_vm3, %v1233_v13  ;;  %1330 = vst.msk [vmem:[#allocation2 + $0x198] sm:$0xff] %vm264_vm3, %v1265_v14  ;;  %v2355_v28 = vpack.c.bf16 %v1656_v24, %v1656_v24 }
 0x15a   : > { %v1465_v20 = vadd.f32 %v3018_v34, %v1394_v12  ;;  %v1395_v22 = vld [vmem:[#allocation2 + $0x188] sm:$0xff]  ;;  %v1434_v25 = vadd.f32 %v3018_v34, %v1363_v21  ;;  %1945 = vst.msk [vmem:[%s3031_s11 + $0x3c] sm:$0xf] %vm1929_vm6, %v2323_v27  ;;  %v1625_v35 = vsel %vm1497_vm9, %v1433_v19, %v1561_v29  ;;  %v1039_v37 = vpop.f32.mrb[40].mxu0  ;;  %v1167_v38 = vpop.f32.mrb[40].mxu1  ;;  %v352_v13 = vld [vmem:[#allocation2 + $0xb8] sm:$0xff] }
 0x15b   : > { %v1466_v26 = vadd.f32 %v3018_v34, %v1395_v22  ;;  %1977 = vst.msk [vmem:[%s3031_s11 + $0xbc] sm:$0xf] %vm1929_vm6, %v2355_v28  ;;  %v2324_v40 = vpack.c.bf16 %v1625_v35, %v1625_v35  ;;  %v1234_v45 = vadd.f32 %v1039_v37, %v349_v30  ;;  %v1041_v46 = vpop.f32.mrb[41].mxu0  ;;  %v1169_v47 = vpop.f32.mrb[41].mxu1  ;;  %v1266_v59 = vadd.f32 %v1167_v38, %v381_v31  ;;  %v384_v14 = vld [vmem:[#allocation2 + $0x1b8] sm:$0xff]  ;;  %v353_v38 = vld [vmem:[#allocation2 + $0xc0] sm:$0xff] }
 0x15c   : > { %vm1529_vm10 = vcmp.gt.f32.partialorder %v1465_v20, 0.0  ;;  %v1593_v32 = vmul.f32 0.01, %v1465_v20  ;;  %vm1498_vm11 = vcmp.gt.f32.partialorder %v1434_v25, 0.0  ;;  %v1562_v33 = vmul.f32 0.01, %v1434_v25 }
 0x15d   : > { %vm1530_vm12 = vcmp.gt.f32.partialorder %v1466_v26, 0.0  ;;  %v1594_v36 = vmul.f32 0.01, %v1466_v26  ;;  %v1364_v43 = vld [vmem:[#allocation2 + $0x90] sm:$0xff]  ;;  %v1042_v52 = vpop.f32.mrb[42].mxu0  ;;  %v1170_v54 = vpop.f32.mrb[42].mxu1 }
 0x15e   : > { %v1657_v41 = vsel %vm1529_vm10, %v1465_v20, %v1593_v32  ;;  %v1626_v42 = vsel %vm1498_vm11, %v1434_v25, %v1562_v33  ;;  %v1396_v44 = vld [vmem:[#allocation2 + $0x190] sm:$0xff]  ;;  %v1435_v51 = vadd.f32 %v3018_v34, %v1364_v43  ;;  %1946 = vst.msk [vmem:[%s3031_s11 + $0x40] sm:$0xf] %vm1929_vm6, %v2324_v40  ;;  %v1235_v60 = vadd.f32 %v1042_v52, %v350_v39  ;;  %v1044_v61 = vpop.f32.mrb[43].mxu0  ;;  %v1172_v62 = vpop.f32.mrb[43].mxu1  ;;  %v385_v40 = vld [vmem:[#allocation2 + $0x1c0] sm:$0xff] }
 0x15f   : > { %v2356_v48 = vpack.c.bf16 %v1657_v41, %v1657_v41  ;;  %v2325_v49 = vpack.c.bf16 %v1626_v42, %v1626_v42  ;;  %v1658_v50 = vsel %vm1530_vm12, %v1466_v26, %v1594_v36  ;;  %v1467_v56 = vadd.f32 %v3018_v34, %v1396_v44  ;;  %1299 = vst.msk [vmem:[#allocation2 + $0xa0] sm:$0xff] %vm264_vm3, %v1234_v45  ;;  %v3198_v47 = vld [vmem:[%s3348_s2] ss:$0 sm:$0xff] }
 0x160   : > { %v2357_v55 = vpack.c.bf16 %v1658_v50, %v1658_v50  ;;  %v1365_v57 = vld [vmem:[#allocation2 + $0x98] sm:$0xff]  ;;  %vm1499_vm13 = vcmp.gt.f32.partialorder %v1435_v51, 0.0  ;;  %v1563_v63 = vmul.f32 0.01, %v1435_v51  ;;  %1331 = vst.msk [vmem:[#allocation2 + $0x1a0] sm:$0xff] %vm264_vm3, %v1266_v59  ;;  %1300 = vst.msk [vmem:[#allocation2 + $0xa8] sm:$0xff] %vm264_vm3, %v1235_v60  ;;  %v1267_v3 = vadd.f32 %v1170_v54, %v382_v53 }
 0x161   : > { %v1397_v58 = vld [vmem:[#allocation2 + $0x198] sm:$0xff]  ;;  %1978 = vst.msk [vmem:[%s3031_s11 + $0xc0] sm:$0xf] %vm1929_vm6, %v2356_v48  ;;  %1947 = vst.msk [vmem:[%s3031_s11 + $0x44] sm:$0xf] %vm1929_vm6, %v2325_v49  ;;  %v1436_v0 = vadd.f32 %v3018_v34, %v1365_v57  ;;  %vm1531_vm14 = vcmp.gt.f32.partialorder %v1467_v56, 0.0 }
 0x162   : > { %v1468_v1 = vadd.f32 %v3018_v34, %v1397_v58  ;;  %1979 = vst.msk [vmem:[%s3031_s11 + $0xc4] sm:$0xf] %vm1929_vm6, %v2357_v55  ;;  %v1595_v2 = vmul.f32 0.01, %v1467_v56  ;;  %v1627_v6 = vsel %vm1499_vm13, %v1435_v51, %v1563_v63  ;;  %v1047_v11 = vpop.f32.mrb[44].mxu0  ;;  %v1175_v12 = vpop.f32.mrb[44].mxu1 }
 0x163   : > { %vm1500_vm15 = vcmp.gt.f32.partialorder %v1436_v0, 0.0  ;;  %v1564_v7 = vmul.f32 0.01, %v1436_v0  ;;  %v2326_v8 = vpack.c.bf16 %v1627_v6, %v1627_v6  ;;  %1332 = vst.msk [vmem:[#allocation2 + $0x1a8] sm:$0xff] %vm264_vm3, %v1267_v3  ;;  %v1236_v17 = vadd.f32 %v1047_v11, %v351_v4  ;;  %v1049_v19 = vpop.f32.mrb[45].mxu0  ;;  %v1177_v20 = vpop.f32.mrb[45].mxu1 }
 0x164   : > { %vm1532_vm0 = vcmp.gt.f32.partialorder %v1468_v1, 0.0  ;;  %v1659_v9 = vsel %vm1531_vm14, %v1467_v56, %v1595_v2  ;;  %v1596_v10 = vmul.f32 0.01, %v1468_v1  ;;  %v1268_v18 = vadd.f32 %v1175_v12, %v383_v5  ;;  %v1050_v23 = vpop.f32.mrb[46].mxu0  ;;  %v1178_v24 = vpop.f32.mrb[46].mxu1  ;;  %v354_v51 = vld [vmem:[#allocation2 + $0xc8] sm:$0xff] }
 0x165   : > { %v2358_v15 = vpack.c.bf16 %v1659_v9, %v1659_v9  ;;  %v1628_v16 = vsel %vm1500_vm15, %v1436_v0, %v1564_v7  ;;  %1948 = vst.msk [vmem:[%s3031_s11 + $0x48] sm:$0xf] %vm1929_vm6, %v2326_v8  ;;  %v1237_v27 = vadd.f32 %v1050_v23, %v352_v13  ;;  %v1269_v28 = vadd.f32 %v1178_v24, %v384_v14  ;;  %v1052_v29 = vpop.f32.mrb[47].mxu0  ;;  %v1180_v30 = vpop.f32.mrb[47].mxu1  ;;  %v386_v57 = vld [vmem:[#allocation2 + $0x1c8] sm:$0xff]  ;;  %v355_v12 = vld [vmem:[#allocation2 + $0xd0] sm:$0xff] }
 0x166   : > { %v2327_v21 = vpack.c.bf16 %v1628_v16, %v1628_v16  ;;  %v1660_v22 = vsel %vm1532_vm0, %v1468_v1, %v1596_v10  ;;  %v1366_v26 = vld [vmem:[#allocation2 + $0xa0] sm:$0xff]  ;;  %1301 = vst.msk [vmem:[#allocation2 + $0xb0] sm:$0xff] %vm264_vm3, %v1236_v17  ;;  %1333 = vst.msk [vmem:[#allocation2 + $0x1b0] sm:$0xff] %vm264_vm3, %v1268_v18  ;;  %v387_v13 = vld [vmem:[#allocation2 + $0x1d0] sm:$0xff] }
 0x167   : > { %1980 = vst.msk [vmem:[%s3031_s11 + $0xc8] sm:$0xf] %vm1929_vm6, %v2358_v15  ;;  %v2359_v25 = vpack.c.bf16 %v1660_v22, %v1660_v22  ;;  %v1437_v31 = vadd.f32 %v3018_v34, %v1366_v26  ;;  %v1398_v32 = vld [vmem:[#allocation2 + $0x1a0] sm:$0xff]  ;;  %v1367_v33 = vld [vmem:[#allocation2 + $0xa8] sm:$0xff]  ;;  %v356_v20 = vld [vmem:[#allocation2 + $0xd8] sm:$0xff] }
 0x168   : > { %1949 = vst.msk [vmem:[%s3031_s11 + $0x4c] sm:$0xf] %vm1929_vm6, %v2327_v21  ;;  %v1469_v36 = vadd.f32 %v3018_v34, %v1398_v32  ;;  %v1438_v37 = vadd.f32 %v3018_v34, %v1367_v33  ;;  %v388_v21 = vld [vmem:[#allocation2 + $0x1d8] sm:$0xff] }
 0x169   : > { %1981 = vst.msk [vmem:[%s3031_s11 + $0xcc] sm:$0xf] %vm1929_vm6, %v2359_v25  ;;  %vm1501_vm1 = vcmp.gt.f32.partialorder %v1437_v31, 0.0  ;;  %v1565_v35 = vmul.f32 0.01, %v1437_v31 }
 0x16a   : > { %1302 = vst.msk [vmem:[#allocation2 + $0xb8] sm:$0xff] %vm264_vm3, %v1237_v27  ;;  %1334 = vst.msk [vmem:[#allocation2 + $0x1b8] sm:$0xff] %vm264_vm3, %v1269_v28  ;;  %v1399_v39 = vld [vmem:[#allocation2 + $0x1a8] sm:$0xff]  ;;  %vm1533_vm2 = vcmp.gt.f32.partialorder %v1469_v36, 0.0  ;;  %v1597_v42 = vmul.f32 0.01, %v1469_v36 }
 0x16b   : > { %v1629_v41 = vsel %vm1501_vm1, %v1437_v31, %v1565_v35  ;;  %vm1502_vm4 = vcmp.gt.f32.partialorder %v1438_v37, 0.0  ;;  %v1055_v43 = vpop.f32.mrb[48].mxu0  ;;  %v1183_v44 = vpop.f32.mrb[48].mxu1  ;;  %v1566_v46 = vmul.f32 0.01, %v1438_v37  ;;  %v1470_v48 = vadd.f32 %v3198_v47, %v1399_v39 }
 0x16c   : > { %v2328_v45 = vpack.c.bf16 %v1629_v41, %v1629_v41  ;;  %v1238_v34 = vadd.f32 %v1055_v43, %v353_v38  ;;  %v1057_v49 = vpop.f32.mrb[49].mxu0  ;;  %v1185_v50 = vpop.f32.mrb[49].mxu1  ;;  %v1661_v52 = vsel %vm1533_vm2, %v1469_v36, %v1597_v42  ;;  %v1270_v55 = vadd.f32 %v1183_v44, %v385_v40 }
 0x16d   : > { %v1368_v53 = vld [vmem:[#allocation2 + $0xb0] sm:$0xff]  ;;  %v1058_v56 = vpop.f32.mrb[50].mxu0  ;;  %v1186_v58 = vpop.f32.mrb[50].mxu1  ;;  %v2360_v59 = vpack.c.bf16 %v1661_v52, %v1661_v52  ;;  %v1630_v60 = vsel %vm1502_vm4, %v1438_v37, %v1566_v46  ;;  %vm1534_vm5 = vcmp.gt.f32.partialorder %v1470_v48, 0.0  ;;  %v1598_v61 = vmul.f32 0.01, %v1470_v48 }
 0x16e   : > { %v1400_v54 = vld [vmem:[#allocation2 + $0x1b0] sm:$0xff]  ;;  %1950 = vst.msk [vmem:[%s3031_s11 + $0x50] sm:$0xf] %vm1929_vm6, %v2328_v45  ;;  %v1060_v62 = vpop.f32.mrb[51].mxu0  ;;  %v1188_v63 = vpop.f32.mrb[51].mxu1  ;;  %v2329_v0 = vpack.c.bf16 %v1630_v60, %v1630_v60  ;;  %v1439_v1 = vadd.f32 %v3198_v47, %v1368_v53  ;;  %v1239_v5 = vadd.f32 %v1058_v56, %v354_v51  ;;  %v1271_v9 = vadd.f32 %v1186_v58, %v386_v57  ;;  %v357_v49 = vld [vmem:[#allocation2 + $0xe0] sm:$0xff] }
 0x16f   : > { %1303 = vst.msk [vmem:[#allocation2 + $0xc0] sm:$0xff] %vm264_vm3, %v1238_v34  ;;  %v1471_v2 = vadd.f32 %v3198_v47, %v1400_v54  ;;  %1335 = vst.msk [vmem:[#allocation2 + $0x1c0] sm:$0xff] %vm264_vm3, %v1270_v55  ;;  %v1662_v6 = vsel %vm1534_vm5, %v1470_v48, %v1598_v61  ;;  %v389_v52 = vld [vmem:[#allocation2 + $0x1e0] sm:$0xff]  ;;  %v358_v58 = vld [vmem:[#allocation2 + $0xe8] sm:$0xff] }
 0x170   : > { %1982 = vst.msk [vmem:[%s3031_s11 + $0xd0] sm:$0xf] %vm1929_vm6, %v2360_v59  ;;  %1951 = vst.msk [vmem:[%s3031_s11 + $0x54] sm:$0xf] %vm1929_vm6, %v2329_v0  ;;  %v2361_v10 = vpack.c.bf16 %v1662_v6, %v1662_v6  ;;  %vm1503_vm7 = vcmp.gt.f32.partialorder %v1439_v1, 0.0  ;;  %v390_v0 = vld [vmem:[#allocation2 + $0x1e8] sm:$0xff] }
 0x171   : > { %v1369_v3 = vld [vmem:[#allocation2 + $0xb8] sm:$0xff]  ;;  %v1567_v11 = vmul.f32 0.01, %v1439_v1  ;;  %vm1535_vm8 = vcmp.gt.f32.partialorder %v1471_v2, 0.0  ;;  %1304 = vst.msk [vmem:[#allocation2 + $0xc8] sm:$0xff] %vm264_vm3, %v1239_v5  ;;  %1336 = vst.msk [vmem:[#allocation2 + $0x1c8] sm:$0xff] %vm264_vm3, %v1271_v9 }
 0x172   : > { %v1401_v4 = vld [vmem:[#allocation2 + $0x1b8] sm:$0xff]  ;;  %v1440_v7 = vadd.f32 %v3198_v47, %v1369_v3  ;;  %v1599_v14 = vmul.f32 0.01, %v1471_v2  ;;  %1983 = vst.msk [vmem:[%s3031_s11 + $0xd4] sm:$0xf] %vm1929_vm6, %v2361_v10  ;;  %v1063_v18 = vpop.f32.mrb[52].mxu0 }
 0x173   : > { %v1472_v8 = vadd.f32 %v3198_v47, %v1401_v4  ;;  %v1631_v16 = vsel %vm1503_vm7, %v1439_v1, %v1567_v11  ;;  %v1191_v19 = vpop.f32.mrb[52].mxu1  ;;  %v1240_v25 = vadd.f32 %v1063_v18, %v355_v12  ;;  %v1065_v26 = vpop.f32.mrb[53].mxu0 }
 0x174   : > { %vm1504_vm9 = vcmp.gt.f32.partialorder %v1440_v7, 0.0  ;;  %v1568_v15 = vmul.f32 0.01, %v1440_v7  ;;  %v2330_v22 = vpack.c.bf16 %v1631_v16, %v1631_v16  ;;  %v1663_v23 = vsel %vm1535_vm8, %v1471_v2, %v1599_v14  ;;  %v1193_v27 = vpop.f32.mrb[53].mxu1  ;;  %v1066_v33 = vpop.f32.mrb[54].mxu0 }
 0x175   : > { %vm1536_vm10 = vcmp.gt.f32.partialorder %v1472_v8, 0.0  ;;  %v1600_v17 = vmul.f32 0.01, %v1472_v8  ;;  %v2362_v28 = vpack.c.bf16 %v1663_v23, %v1663_v23  ;;  %v1272_v32 = vadd.f32 %v1191_v19, %v387_v13  ;;  %v1194_v35 = vpop.f32.mrb[54].mxu1  ;;  %1305 = vst.msk [vmem:[#allocation2 + $0xd0] sm:$0xff] %vm264_vm3, %v1240_v25  ;;  %v1068_v41 = vpop.f32.mrb[55].mxu0 }
 0x176   : > { %v1632_v24 = vsel %vm1504_vm9, %v1440_v7, %v1568_v15  ;;  %v1370_v31 = vld [vmem:[#allocation2 + $0xc0] sm:$0xff]  ;;  %1952 = vst.msk [vmem:[%s3031_s11 + $0x58] sm:$0xf] %vm1929_vm6, %v2330_v22  ;;  %v1241_v39 = vadd.f32 %v1066_v33, %v356_v20  ;;  %v1273_v40 = vadd.f32 %v1194_v35, %v388_v21  ;;  %v1196_v42 = vpop.f32.mrb[55].mxu1  ;;  %v359_v22 = vld [vmem:[#allocation2 + $0xf0] sm:$0xff] }
 0x177   : > { %v2331_v29 = vpack.c.bf16 %v1632_v24, %v1632_v24  ;;  %v1664_v30 = vsel %vm1536_vm10, %v1472_v8, %v1600_v17  ;;  %v1441_v37 = vadd.f32 %v3198_v47, %v1370_v31  ;;  %v1402_v38 = vld [vmem:[#allocation2 + $0x1c0] sm:$0xff]  ;;  %1984 = vst.msk [vmem:[%s3031_s11 + $0xd8] sm:$0xf] %vm1929_vm6, %v2362_v28  ;;  %v391_v23 = vld [vmem:[#allocation2 + $0x1f0] sm:$0xff]  ;;  %v360_v31 = vld [vmem:[#allocation2 + $0xf8] sm:$0xff] }
 0x178   : > { %v2363_v36 = vpack.c.bf16 %v1664_v30, %v1664_v30  ;;  %v1473_v43 = vadd.f32 %v3198_v47, %v1402_v38  ;;  %1337 = vst.msk [vmem:[#allocation2 + $0x1d0] sm:$0xff] %vm264_vm3, %v1272_v32  ;;  %v1371_v45 = vld [vmem:[#allocation2 + $0xc8] sm:$0xff]  ;;  %1306 = vst.msk [vmem:[#allocation2 + $0xd8] sm:$0xff] %vm264_vm3, %v1241_v39  ;;  %v392_v32 = vld [vmem:[#allocation2 + $0x1f8] sm:$0xff] }
 0x179   : > { %1953 = vst.msk [vmem:[%s3031_s11 + $0x5c] sm:$0xf] %vm1929_vm6, %v2331_v29  ;;  %vm1505_vm11 = vcmp.gt.f32.partialorder %v1441_v37, 0.0  ;;  %v1569_v44 = vmul.f32 0.01, %v1441_v37  ;;  %v1442_v48 = vadd.f32 %v3198_v47, %v1371_v45  ;;  %v1403_v34 = vld [vmem:[#allocation2 + $0x1c8] sm:$0xff] }
 0x17a   : > { %1985 = vst.msk [vmem:[%s3031_s11 + $0xdc] sm:$0xf] %vm1929_vm6, %v2363_v36  ;;  %vm1537_vm12 = vcmp.gt.f32.partialorder %v1473_v43, 0.0  ;;  %v1601_v46 = vmul.f32 0.01, %v1473_v43  ;;  %v1474_v51 = vadd.f32 %v3198_v47, %v1403_v34  ;;  %v1071_v56 = vpop.f32.mrb[56].mxu0 }
 0x17b   : > { %1338 = vst.msk [vmem:[#allocation2 + $0x1d8] sm:$0xff] %vm264_vm3, %v1273_v40  ;;  %v1633_v50 = vsel %vm1505_vm11, %v1441_v37, %v1569_v44  ;;  %vm1506_vm13 = vcmp.gt.f32.partialorder %v1442_v48, 0.0  ;;  %v1570_v55 = vmul.f32 0.01, %v1442_v48  ;;  %v1199_v57 = vpop.f32.mrb[56].mxu1  ;;  %v1242_v61 = vadd.f32 %v1071_v56, %v357_v49  ;;  %v1073_v62 = vpop.f32.mrb[57].mxu0 }
 0x17c   : > { %v2332_v53 = vpack.c.bf16 %v1633_v50, %v1633_v50  ;;  %v1665_v54 = vsel %vm1537_vm12, %v1473_v43, %v1601_v46  ;;  %vm1538_vm14 = vcmp.gt.f32.partialorder %v1474_v51, 0.0  ;;  %v1602_v60 = vmul.f32 0.01, %v1474_v51  ;;  %v1201_v63 = vpop.f32.mrb[57].mxu1  ;;  %v1372_v2 = vld [vmem:[#allocation2 + $0xd0] sm:$0xff]  ;;  %v1074_v4 = vpop.f32.mrb[58].mxu0 }
 0x17d   : > { %v2364_v59 = vpack.c.bf16 %v1665_v54, %v1665_v54  ;;  %v1634_v1 = vsel %vm1506_vm13, %v1442_v48, %v1570_v55  ;;  %v1274_v3 = vadd.f32 %v1199_v57, %v389_v52  ;;  %v1202_v5 = vpop.f32.mrb[58].mxu1  ;;  %v1443_v8 = vadd.f32 %v3198_v47, %v1372_v2  ;;  %1307 = vst.msk [vmem:[#allocation2 + $0xe0] sm:$0xff] %vm264_vm3, %v1242_v61  ;;  %v1076_v11 = vpop.f32.mrb[59].mxu0 }
 0x17e   : > { %1954 = vst.msk [vmem:[%s3031_s11 + $0x60] sm:$0xf] %vm1929_vm6, %v2332_v53  ;;  %v2333_v6 = vpack.c.bf16 %v1634_v1, %v1634_v1  ;;  %v1666_v7 = vsel %vm1538_vm14, %v1474_v51, %v1602_v60  ;;  %v1243_v10 = vadd.f32 %v1074_v4, %v358_v58  ;;  %v1204_v12 = vpop.f32.mrb[59].mxu1  ;;  %v1275_v17 = vadd.f32 %v1202_v5, %v390_v0 }
 0x17f   : > { %1986 = vst.msk [vmem:[%s3031_s11 + $0xe0] sm:$0xf] %vm1929_vm6, %v2364_v59  ;;  %v1404_v9 = vld [vmem:[#allocation2 + $0x1d0] sm:$0xff]  ;;  %v2365_v13 = vpack.c.bf16 %v1666_v7, %v1666_v7  ;;  %v1373_v15 = vld [vmem:[#allocation2 + $0xd8] sm:$0xff]  ;;  %vm1507_vm15 = vcmp.gt.f32.partialorder %v1443_v8, 0.0 }
 0x180   : > { %v1475_v14 = vadd.f32 %v3198_v47, %v1404_v9  ;;  %1339 = vst.msk [vmem:[#allocation2 + $0x1e0] sm:$0xff] %vm264_vm3, %v1274_v3  ;;  %v1571_v18 = vmul.f32 0.01, %v1443_v8  ;;  %v1444_v19 = vadd.f32 %v3198_v47, %v1373_v15  ;;  %1308 = vst.msk [vmem:[#allocation2 + $0xe8] sm:$0xff] %vm264_vm3, %v1243_v10 }
 0x181   : > { %1955 = vst.msk [vmem:[%s3031_s11 + $0x64] sm:$0xf] %vm1929_vm6, %v2333_v6  ;;  %1987 = vst.msk [vmem:[%s3031_s11 + $0xe4] sm:$0xf] %vm1929_vm6, %v2365_v13 }
 0x182   : > { %v1405_v16 = vld [vmem:[#allocation2 + $0x1d8] sm:$0xff]  ;;  %vm1539_vm0 = vcmp.gt.f32.partialorder %v1475_v14, 0.0  ;;  %v1603_v21 = vmul.f32 0.01, %v1475_v14  ;;  %1340 = vst.msk [vmem:[#allocation2 + $0x1e8] sm:$0xff] %vm264_vm3, %v1275_v17  ;;  %v1635_v24 = vsel %vm1507_vm15, %v1443_v8, %v1571_v18  ;;  %vm1508_vm1 = vcmp.gt.f32.partialorder %v1444_v19, 0.0 }
 0x183   : > { %v1476_v20 = vadd.f32 %v3198_v47, %v1405_v16  ;;  %v1572_v25 = vmul.f32 0.01, %v1444_v19  ;;  %v2334_v26 = vpack.c.bf16 %v1635_v24, %v1635_v24  ;;  %v1079_v29 = vpop.f32.mrb[60].mxu0  ;;  %v1207_v30 = vpop.f32.mrb[60].mxu1 }
 0x184   : > { %v1667_v27 = vsel %vm1539_vm0, %v1475_v14, %v1603_v21  ;;  %v1244_v36 = vadd.f32 %v1079_v29, %v359_v22  ;;  %v1276_v37 = vadd.f32 %v1207_v30, %v391_v23  ;;  %v1081_v38 = vpop.f32.mrb[61].mxu0  ;;  %v1209_v39 = vpop.f32.mrb[61].mxu1  ;;  %v1374_v42 = vld [vmem:[#allocation2 + $0xe0] sm:$0xff] }
 0x185   : > { %vm1540_vm2 = vcmp.gt.f32.partialorder %v1476_v20, 0.0  ;;  %v1604_v28 = vmul.f32 0.01, %v1476_v20  ;;  %v2366_v33 = vpack.c.bf16 %v1667_v27, %v1667_v27  ;;  %v1636_v35 = vsel %vm1508_vm1, %v1444_v19, %v1572_v25  ;;  %1956 = vst.msk [vmem:[%s3031_s11 + $0x68] sm:$0xf] %vm1929_vm6, %v2334_v26  ;;  %v1082_v43 = vpop.f32.mrb[62].mxu0 }
 0x186   : > { %v2335_v40 = vpack.c.bf16 %v1636_v35, %v1636_v35  ;;  %v1210_v44 = vpop.f32.mrb[62].mxu1  ;;  %v1445_v46 = vadd.f32 %v3198_v47, %v1374_v42  ;;  %1309 = vst.msk [vmem:[#allocation2 + $0xf0] sm:$0xff] %vm264_vm3, %v1244_v36  ;;  %1341 = vst.msk [vmem:[#allocation2 + $0x1f0] sm:$0xff] %vm264_vm3, %v1276_v37  ;;  %v1245_v34 = vadd.f32 %v1082_v43, %v360_v31  ;;  %v1084_v50 = vpop.f32.mrb[63].mxu0 }
 0x187   : > { %v1668_v41 = vsel %vm1540_vm2, %v1476_v20, %v1604_v28  ;;  %1988 = vst.msk [vmem:[%s3031_s11 + $0xe8] sm:$0xf] %vm1929_vm6, %v2366_v33  ;;  %v1406_v48 = vld [vmem:[#allocation2 + $0x1e0] sm:$0xff]  ;;  %v1277_v49 = vadd.f32 %v1210_v44, %v392_v32  ;;  %v1212_v51 = vpop.f32.mrb[63].mxu1  ;;  %v1375_v53 = vld [vmem:[#allocation2 + $0xe8] sm:$0xff] }
 0x188   : > { %v2367_v45 = vpack.c.bf16 %v1668_v41, %v1668_v41  ;;  %1957 = vst.msk [vmem:[%s3031_s11 + $0x6c] sm:$0xf] %vm1929_vm6, %v2335_v40  ;;  %v1477_v52 = vadd.f32 %v3198_v47, %v1406_v48  ;;  %vm1509_vm4 = vcmp.gt.f32.partialorder %v1445_v46, 0.0  ;;  %v1573_v54 = vmul.f32 0.01, %v1445_v46 }
 0x189   : > { %v1446_v55 = vadd.f32 %v3198_v47, %v1375_v53  ;;  %v1407_v56 = vld [vmem:[#allocation2 + $0x1e8] sm:$0xff]  ;;  %1310 = vst.msk [vmem:[#allocation2 + $0xf8] sm:$0xff] %vm264_vm3, %v1245_v34  ;;  %1342 = vst.msk [vmem:[#allocation2 + $0x1f8] sm:$0xff] %vm264_vm3, %v1277_v49 }
 0x18a   : > { %1989 = vst.msk [vmem:[%s3031_s11 + $0xec] sm:$0xf] %vm1929_vm6, %v2367_v45  ;;  %vm1541_vm5 = vcmp.gt.f32.partialorder %v1477_v52, 0.0  ;;  %v1605_v57 = vmul.f32 0.01, %v1477_v52  ;;  %v1478_v58 = vadd.f32 %v3198_v47, %v1407_v56  ;;  %v1637_v59 = vsel %vm1509_vm4, %v1445_v46, %v1573_v54 }
 0x18b   : > { %vm1510_vm7 = vcmp.gt.f32.partialorder %v1446_v55, 0.0  ;;  %v1574_v60 = vmul.f32 0.01, %v1446_v55  ;;  %v2336_v61 = vpack.c.bf16 %v1637_v59, %v1637_v59 }
 0x18c   : > { %v1669_v62 = vsel %vm1541_vm5, %v1477_v52, %v1605_v57  ;;  %vm1542_vm8 = vcmp.gt.f32.partialorder %v1478_v58, 0.0  ;;  %v1606_v63 = vmul.f32 0.01, %v1478_v58 }
 0x18d   : > { %v2368_v0 = vpack.c.bf16 %v1669_v62, %v1669_v62  ;;  %v1638_v1 = vsel %vm1510_vm7, %v1446_v55, %v1574_v60  ;;  %1958 = vst.msk [vmem:[%s3031_s11 + $0x70] sm:$0xf] %vm1929_vm6, %v2336_v61  ;;  %v1376_v4 = vld [vmem:[#allocation2 + $0xf0] sm:$0xff] }
 0x18e   : > { %v2337_v2 = vpack.c.bf16 %v1638_v1, %v1638_v1  ;;  %v1670_v3 = vsel %vm1542_vm8, %v1478_v58, %v1606_v63  ;;  %v1408_v5 = vld [vmem:[#allocation2 + $0x1f0] sm:$0xff]  ;;  %v1447_v7 = vadd.f32 %v3198_v47, %v1376_v4 }
 0x18f   : > { %1990 = vst.msk [vmem:[%s3031_s11 + $0xf0] sm:$0xf] %vm1929_vm6, %v2368_v0  ;;  %v2369_v6 = vpack.c.bf16 %v1670_v3, %v1670_v3  ;;  %v1479_v8 = vadd.f32 %v3198_v47, %v1408_v5 }
 0x190   : > { %1959 = vst.msk [vmem:[%s3031_s11 + $0x74] sm:$0xf] %vm1929_vm6, %v2337_v2  ;;  %v1377_v9 = vld [vmem:[#allocation2 + $0xf8] sm:$0xff]  ;;  %vm1511_vm3 = vcmp.gt.f32.partialorder %v1447_v7, 0.0  ;;  %v1575_v11 = vmul.f32 0.01, %v1447_v7 }
 0x191   : > { %v1409_v10 = vld [vmem:[#allocation2 + $0x1f8] sm:$0xff]  ;;  %1991 = vst.msk [vmem:[%s3031_s11 + $0xf4] sm:$0xf] %vm1929_vm6, %v2369_v6  ;;  %vm1543_vm9 = vcmp.gt.f32.partialorder %v1479_v8, 0.0  ;;  %v1607_v12 = vmul.f32 0.01, %v1479_v8  ;;  %v1448_v13 = vadd.f32 %v3198_v47, %v1377_v9 }
 0x192   : > { %v1480_v14 = vadd.f32 %v3198_v47, %v1409_v10  ;;  %v1639_v15 = vsel %vm1511_vm3, %v1447_v7, %v1575_v11 }
 0x193   : > { %v1671_v16 = vsel %vm1543_vm9, %v1479_v8, %v1607_v12  ;;  %v2338_v17 = vpack.c.bf16 %v1639_v15, %v1639_v15  ;;  %vm1512_vm10 = vcmp.gt.f32.partialorder %v1448_v13, 0.0  ;;  %v1576_v19 = vmul.f32 0.01, %v1448_v13 }
 0x194   : > { %v2370_v18 = vpack.c.bf16 %v1671_v16, %v1671_v16  ;;  %vm1544_vm11 = vcmp.gt.f32.partialorder %v1480_v14, 0.0  ;;  %v1608_v20 = vmul.f32 0.01, %v1480_v14 }
 0x195   : > { %1960 = vst.msk [vmem:[%s3031_s11 + $0x78] sm:$0xf] %vm1929_vm6, %v2338_v17  ;;  %v1640_v21 = vsel %vm1512_vm10, %v1448_v13, %v1576_v19 }
 0x196   : > { %1992 = vst.msk [vmem:[%s3031_s11 + $0xf8] sm:$0xf] %vm1929_vm6, %v2370_v18  ;;  %v2339_v47 = vpack.c.bf16 %v1640_v21, %v1640_v21  ;;  %v1672_v22 = vsel %vm1544_vm11, %v1480_v14, %v1608_v20 }
 0x197   : > { %v2371_v23 = vpack.c.bf16 %v1672_v22, %v1672_v22 }
 0x198   : > { %1961 = vst.msk [vmem:[%s3031_s11 + $0x7c] sm:$0xf] %vm1929_vm6, %v2339_v47 }
 0x199   : > { %1993 = vst.msk [vmem:[%s3031_s11 + $0xfc] sm:$0xf] %vm1929_vm6, %v2371_v23 }
 0x19a   : > { %2573 = shalt.err (!%p2570_p5)
}
 0x19b   : > { %s2574_s6 = scalar_lea.hbm %s3290_s28, 4096  ;;  %s2578_s9 = scalar_lea.hbm %s3349_s3, 401408 }
 0x19c   : > { %p2575_p6 = scmp.ne.s32.totalorder %s3290_s28, %s2574_s6  ;;  %p2579_p10 = scmp.lt.u32.totalorder %s3290_s28, %s3349_s3 }
 0x19d   : > { %p2580_p11 = scmp.lt.u32.totalorder %s2578_s9, %s2574_s6  ;;  %p2582_p13 = scmp.lt.u32.totalorder %s2574_s6, %s3290_s28 }
 0x19e   : > { %p2576_p7 = pnand %p2575_p6, %p2706_p4 }
 0x19f   : > { %p2581_p12 = por %p2580_p11, %p2579_p10 }
 0x1a0   : > { %p2577_p9 = pneg %p2576_p7 }
 0x1a1   : > { %p2583_p0 = por %p2582_p13, %p2581_p12 }
 0x1a3   : > { %p2584_p1 = pnand %p2583_p0, %p2577_p9 }
 0x1a5   : > { %2587 = shalt.err (!%p2584_p1)
}
 0x1a6   : > { %s2644_s18 = smov 64   ;;  %s2645_s19 = smov 4  }
 0x1a7   : > { %2393 = dma.vmem_to_hbm [thread:$0]  (%p2706_p4), %s3292_s23, 4096, %s3290_s28, %s3300_s15, %s2644_s18, %s2644_s18, %s2645_s19  }
 0x1a8 PF: > { %p2399_p2 = scmp.ge.s32.totalorder %s2638_s17, 2  ;;  %s2024_s21 = sand.u32 1, %s2618_s12  }
 0x1a9   : > { %s2025_s26 = scalar_lea.sflag [#allocation4], %s2024_s21 }
 0x1aa   : > { %p2396_p3 = pnand %p2399_p2, %p2713_p8 }
 0x1ac   : > { %2613 = dma.done.wait (!%p2396_p3), %s2025_s26, 4096  }
 0x1ad   : > { %2615 = vsyncadd (!%p2396_p3), %s2025_s26, 4294963200  ;;  %s16_s17 = sadd.s32 1, %s2638_s17   ;;  %s3352_s12 = smov %s2622_s13 }
 0x1ae   : > { %p13_p5 = scmp.ge.s32.totalorder %s16_s17, 100   ;;  %s3353_s13 = smov %s2626_s14 }
 0x1af   : > { %s3354_s14 = smov %s2719_s25  ;;  %s3355_s15 = smov %s2634_s16 }
 0x1b0   : > { %s3356_s16 = smov %s3358_s20  ;;  %15 = sbr.rel (!%p13_p5) target bundleno = 4 (0x4), region = 81 }
 0x1b7   :  { %2030 = vsyncpa [#allocation4], 1 }
 0x1b8   :  { %2032 = vsyncpa [#allocation4 + $0x1], 1 }

</bundles_post_ra>
